<compile_context>
chip_gen: v7x
topology: tpu7x:2x2x1
jax: 0.10.0
libtpu: 0.0.40
codegen_flags: <defaults>
</compile_context>

<pallas_src>
import math
import functools

import jax
import jax.numpy as jnp
from jax.experimental import pallas as pl
from jax.experimental.pallas import tpu as pltpu


# ----------------------------------------------------------------------------
# helpers
# ----------------------------------------------------------------------------

def _pick_vmem_limit():
    """Generation-aware scoped-VMEM limit (v5e/v6e: 128 MiB, v7x: 64 MiB)."""
    try:
        cap = int(pltpu.get_tpu_info().vmem_capacity_bytes)
        return int(min(cap * 3 // 4, 96 * 1024 * 1024))
    except Exception:
        return 32 * 1024 * 1024


_VMEM_LIMIT = _pick_vmem_limit()


def _row_tile(M, target=512):
    """Largest multiple-of-8 divisor of M that is <= target (else M itself)."""
    if M <= target:
        return M
    for t in range(target - (target % 8), 7, -8):
        if M % t == 0:
            return t
    return M  # TODO(synk): pad awkward M instead of falling back to one tile.


def _pick_chunk(L, Kc):
    """Sequence tile: multiple of 8 dividing L, >= Kc-1 (conv tail)."""
    for c in (16, 8):
        if L % c == 0 and c >= Kc - 1:
            return c
    return L


def _gelu_exact(x):
    """Exact (erf-based) GELU, matching torch.nn.GELU() default.

    erf is evaluated in-kernel with the Abramowitz&Stegun 7.1.26 rational
    approximation (|abs err| < 1.5e-7) using only exp / div / where.
    TODO(synk): switch to jax.lax.erf once Mosaic lowers erf_p.
    """
    z = x * 0.7071067811865476
    az = jnp.abs(z)
    t = 1.0 / (1.0 + 0.3275911 * az)
    poly = t * (0.254829592 + t * (-0.284496736 + t * (1.421413741
             + t * (-1.453152027 + t * 1.061405429))))
    erf_abs = 1.0 - poly * jnp.exp(-az * az)
    erf = jnp.where(z >= 0.0, erf_abs, -erf_abs)
    return 0.5 * x * (1.0 + erf)


# ----------------------------------------------------------------------------
# small row-tiled kernels (encoder / decoder)
# ----------------------------------------------------------------------------

def _linear_kernel(x_ref, w_ref, b_ref, o_ref):
    o_ref[...] = jnp.dot(x_ref[...].astype(jnp.bfloat16), w_ref[...],
                         preferred_element_type=jnp.float32) + b_ref[...]


def linear_bias_pallas(x, w_bf16, b):
    M, K = x.shape
    N = w_bf16.shape[1]
    TM = _row_tile(M)
    return pl.pallas_call(
        _linear_kernel,
        grid=(M // TM,),
        in_specs=[pl.BlockSpec((TM, K), lambda i: (i, 0)),
                  pl.BlockSpec((K, N), lambda i: (0, 0)),
                  pl.BlockSpec((1, N), lambda i: (0, 0))],
        out_specs=pl.BlockSpec((TM, N), lambda i: (i, 0)),
        out_shape=jax.ShapeDtypeStruct((M, N), jnp.float32),
        compiler_params=pltpu.CompilerParams(
            dimension_semantics=("parallel",),
            vmem_limit_bytes=_VMEM_LIMIT),
    )(x, w_bf16, b)


def _decode_softmax_kernel(x_ref, w_ref, b_ref, o_ref):
    y = jnp.dot(x_ref[...].astype(jnp.bfloat16), w_ref[...],
                preferred_element_type=jnp.float32) + b_ref[...]
    y = y - jnp.max(y, axis=-1, keepdims=True)
    e = jnp.exp(y)
    o_ref[...] = e / jnp.sum(e, axis=-1, keepdims=True)


def decode_softmax_pallas(x, w_bf16, b):
    M, K = x.shape
    N = w_bf16.shape[1]
    return pl.pallas_call(
        _decode_softmax_kernel,
        grid=(1,),
        in_specs=[pl.BlockSpec((M, K), lambda i: (0, 0)),
                  pl.BlockSpec((K, N), lambda i: (0, 0)),
                  pl.BlockSpec((1, N), lambda i: (0, 0))],
        out_specs=pl.BlockSpec((M, N), lambda i: (0, 0)),
        out_shape=jax.ShapeDtypeStruct((M, N), jnp.float32),
        compiler_params=pltpu.CompilerParams(
            dimension_semantics=("parallel",),
            vmem_limit_bytes=_VMEM_LIMIT),
    )(x, w_bf16, b)


# ----------------------------------------------------------------------------
# fused MambaBlock kernel (grid = (batch, seq-chunks))
# ----------------------------------------------------------------------------

def _mamba_block_kernel(CH, ED, Ns, Kc, n_chunks,
                        h_ref, ln_g_ref, ln_b_ref, wx_ref, wz_ref,
                        conv_w_ref, conv_b_ref,
                        wdt_ref, wB_ref, wC_ref, dt_w_ref, dt_b_ref,
                        A_ref, D_ref, wout_ref,
                        glu_wa_ref, glu_ba_ref, glu_wg_ref, glu_bg_ref,
                        o_ref, hstate_ref, tail_ref):
    c = pl.program_id(1)
    KT = max(Kc - 1, 1)

    @pl.when(c == 0)
    def _():
        hstate_ref[...] = jnp.zeros((Ns, ED), jnp.float32)
        tail_ref[...] = jnp.zeros((KT, ED), jnp.float32)

    x = h_ref[0]                                           # (CH, H) f32, = skip
    # ---- prenorm LayerNorm ------------------------------------------------
    mu = jnp.mean(x, axis=-1, keepdims=True)
    var = jnp.mean((x - mu) ** 2, axis=-1, keepdims=True)
    xn = (x - mu) * jax.lax.rsqrt(var + 1e-5) * ln_g_ref[...] + ln_b_ref[...]
    xn_b = xn.astype(jnp.bfloat16)

    # ---- in_proj (split halves, lane-aligned) -------------------------------
    xm = jnp.dot(xn_b, wx_ref[...], preferred_element_type=jnp.float32)  # (CH, ED)
    z = jnp.dot(xn_b, wz_ref[...], preferred_element_type=jnp.float32)   # (CH, ED)

    # ---- causal depthwise conv + SiLU (tail carried across chunks) ----------
    wts = conv_w_ref[...]                                  # (Kc, ED)
    if Kc > 1:
        xpad = jnp.concatenate([tail_ref[...], xm], axis=0)  # (CH+Kc-1, ED)
        if n_chunks > 1:
            tail_ref[...] = xm[CH - (Kc - 1):, :]
    else:
        xpad = xm
    acc = jnp.zeros((CH, ED), jnp.float32)
    for k in range(Kc):
        acc = acc + xpad[k:k + CH, :] * wts[k:k + 1, :]
    acc = acc + conv_b_ref[...]
    xc = acc * jax.nn.sigmoid(acc)                         # (CH, ED)
    xc_b = xc.astype(jnp.bfloat16)

    # ---- x_proj split into three lane-dense matmuls --------------------------
    d_in = jnp.dot(xc_b, wdt_ref[...], preferred_element_type=jnp.float32)  # (CH, R)
    Bm = jnp.dot(xc_b, wB_ref[...], preferred_element_type=jnp.float32)     # (CH, Ns)
    Cm = jnp.dot(xc_b, wC_ref[...], preferred_element_type=jnp.float32)     # (CH, Ns)

    # ---- dt_proj (f32) + numerically-stable softplus --------------------------
    dt_pre = jnp.dot(d_in, dt_w_ref[...],
                     preferred_element_type=jnp.float32) + dt_b_ref[...]    # (CH, ED)
    delta = jnp.maximum(dt_pre, 0.0) + jnp.log(1.0 + jnp.exp(-jnp.abs(dt_pre)))

    # ---- selective scan (S6-Real): per-chunk hoisted, per-step 2 VALU ops ----
    A = A_ref[...]                                         # (Ns, ED) = -exp(A_log).T
    dA_all = jnp.exp(delta[:, None, :] * A[None, :, :])    # (CH, Ns, ED)
    u_all = Bm[:, :, None] * (delta * xc)[:, None, :]      # (CH, Ns, ED)

    h = hstate_ref[...]                                    # (Ns, ED) carried state
    hs = []
    for j in range(CH):
        h = dA_all[j] * h + u_all[j]                       # serial critical path
        hs.append(h)
    hstate_ref[...] = h
    hall = jnp.stack(hs, axis=0)                           # (CH, Ns, ED)
    ys = jnp.sum(Cm[:, :, None] * hall, axis=1)            # batched C-contraction
    y = ys + D_ref[...] * xc                               # (CH, ED)

    # ---- SiLU gate + out_proj + GELU + GLU + residual (all fused) ------------
    y = y * (z * jax.nn.sigmoid(z))
    mo = jnp.dot(y.astype(jnp.bfloat16), wout_ref[...],
                 preferred_element_type=jnp.float32)       # (CH, H)
    mo = _gelu_exact(mo)
    mo_b = mo.astype(jnp.bfloat16)
    a = jnp.dot(mo_b, glu_wa_ref[...], preferred_element_type=jnp.float32) + glu_ba_ref[...]
    g = jnp.dot(mo_b, glu_wg_ref[...], preferred_element_type=jnp.float32) + glu_bg_ref[...]
    o_ref[0] = a * jax.nn.sigmoid(g) + x


def mamba_block_pallas(h, blk, *, L, H, ED, dt_rank, Ns, Kc):
    B = h.shape[0]
    CH = _pick_chunk(L, Kc)
    n_chunks = L // CH
    KT = max(Kc - 1, 1)
    kernel = functools.partial(_mamba_block_kernel, CH, ED, Ns, Kc, n_chunks)

    def wmap(b, c):  # grid-invariant weights
        return (0, 0)

    return pl.pallas_call(
        kernel,
        grid=(B, n_chunks),
        in_specs=[
            pl.BlockSpec((1, CH, H), lambda b, c: (b, c, 0)),   # block input
            pl.BlockSpec((1, H), wmap),                         # ln gamma
            pl.BlockSpec((1, H), wmap),                         # ln beta
            pl.BlockSpec((H, ED), wmap),                        # in_proj x half (bf16)
            pl.BlockSpec((H, ED), wmap),                        # in_proj z half (bf16)
            pl.BlockSpec((Kc, ED), wmap),                       # conv weight
            pl.BlockSpec((1, ED), wmap),                        # conv bias
            pl.BlockSpec((ED, dt_rank), wmap),                  # x_proj -> dt (bf16)
            pl.BlockSpec((ED, Ns), wmap),                       # x_proj -> B  (bf16)
            pl.BlockSpec((ED, Ns), wmap),                       # x_proj -> C  (bf16)
            pl.BlockSpec((dt_rank, ED), wmap),                  # dt_proj weight (f32)
            pl.BlockSpec((1, ED), wmap),                        # dt_proj bias
            pl.BlockSpec((Ns, ED), wmap),                       # A (transposed, -exp)
            pl.BlockSpec((1, ED), wmap),                        # D
            pl.BlockSpec((ED, H), wmap),                        # out_proj (bf16)
            pl.BlockSpec((H, H), wmap),                         # GLU value weight (bf16)
            pl.BlockSpec((1, H), wmap),                         # GLU value bias
            pl.BlockSpec((H, H), wmap),                         # GLU gate weight (bf16)
            pl.BlockSpec((1, H), wmap),                         # GLU gate bias
        ],
        out_specs=pl.BlockSpec((1, CH, H), lambda b, c: (b, c, 0)),
        out_shape=jax.ShapeDtypeStruct((B, L, H), jnp.float32),
        scratch_shapes=[pltpu.VMEM((Ns, ED), jnp.float32),      # scan state carry
                        pltpu.VMEM((KT, ED), jnp.float32)],     # conv tail carry
        compiler_params=pltpu.CompilerParams(
            dimension_semantics=("parallel", "arbitrary"),
            vmem_limit_bytes=_VMEM_LIMIT),
    )(h, blk["ln_g"], blk["ln_b"], blk["in_proj_wx"], blk["in_proj_wz"],
      blk["conv_w"], blk["conv_b"], blk["xproj_dt"], blk["xproj_B"], blk["xproj_C"],
      blk["dt_w"], blk["dt_b"], blk["A_t"], blk["D"], blk["out_proj_w"],
      blk["glu_wa"], blk["glu_ba"], blk["glu_wg"], blk["glu_bg"])


# ----------------------------------------------------------------------------
# Parameter init (deterministic, synthetic) + forward
# ----------------------------------------------------------------------------

def init_params(key, *, input_dim, hidden_dim, state_dim, conv_dim,
                expansion, output_dim, num_blocks):
    ED = expansion * hidden_dim
    dt_rank = math.ceil(hidden_dim / 16)

    def uni(k, shape, fan_in):
        s = 1.0 / math.sqrt(fan_in)
        return jax.random.uniform(k, shape, jnp.float32, -s, s)

    keys = iter(jax.random.split(key, 8 + 16 * num_blocks))
    params = {
        "enc_w": uni(next(keys), (input_dim, hidden_dim), input_dim).astype(jnp.bfloat16),
        "enc_b": uni(next(keys), (1, hidden_dim), input_dim),
        "dec_w": uni(next(keys), (hidden_dim, output_dim), hidden_dim).astype(jnp.bfloat16),
        "dec_b": uni(next(keys), (1, output_dim), hidden_dim),
        "blocks": [],
    }
    for _ in range(num_blocks):
        A_log = jnp.log(jnp.broadcast_to(
            jnp.arange(1, state_dim + 1, dtype=jnp.float32), (ED, state_dim)))
        dt = jnp.linspace(1e-3, 1e-1, ED, dtype=jnp.float32)
        dt_bias = dt + jnp.log(-jnp.expm1(-dt))              # inverse softplus
        in_w = uni(next(keys), (hidden_dim, 2 * ED), hidden_dim)
        xproj = uni(next(keys), (ED, dt_rank + 2 * state_dim), ED)
        glu_w = uni(next(keys), (hidden_dim, 2 * hidden_dim), hidden_dim)
        glu_b = uni(next(keys), (1, 2 * hidden_dim), hidden_dim)
        blk = {
            "ln_g": jnp.ones((1, hidden_dim), jnp.float32),
            "ln_b": jnp.zeros((1, hidden_dim), jnp.float32),
            "in_proj_wx": in_w[:, :ED].astype(jnp.bfloat16),
            "in_proj_wz": in_w[:, ED:].astype(jnp.bfloat16),
            "conv_w": uni(next(keys), (conv_dim, ED), conv_dim),
            "conv_b": uni(next(keys), (1, ED), conv_dim),
            # x_proj split into (W_dt | W_B | W_C) for lane-aligned outputs
            "xproj_dt": xproj[:, :dt_rank].astype(jnp.bfloat16),
            "xproj_B": xproj[:, dt_rank:dt_rank + state_dim].astype(jnp.bfloat16),
            "xproj_C": xproj[:, dt_rank + state_dim:].astype(jnp.bfloat16),
            "dt_w": uni(next(keys), (dt_rank, ED), dt_rank),          # f32
            "dt_b": dt_bias.reshape(1, ED),
            "A_t": (-jnp.exp(A_log)).T,                               # (Ns, ED) f32
            "D": jnp.ones((1, ED), jnp.float32),
            "out_proj_w": uni(next(keys), (ED, hidden_dim), ED).astype(jnp.bfloat16),
            # GLU weight split into value / gate halves (lane-aligned)
            "glu_wa": glu_w[:, :hidden_dim].astype(jnp.bfloat16),
            "glu_wg": glu_w[:, hidden_dim:].astype(jnp.bfloat16),
            "glu_ba": glu_b[:, :hidden_dim],
            "glu_bg": glu_b[:, hidden_dim:],
        }
        params["blocks"].append(blk)
    return params, {"ED": ED, "dt_rank": dt_rank, "Ns": state_dim,
                    "H": hidden_dim, "Kc": conv_dim}


def mamba_forward(x, params, dims):
    B, L, Din = x.shape
    H, ED, dt_rank, Ns, Kc = (dims["H"], dims["ED"], dims["dt_rank"],
                              dims["Ns"], dims["Kc"])
    M = B * L

    # linear encoder (embd=False)
    h = linear_bias_pallas(x.reshape(M, Din), params["enc_w"], params["enc_b"])
    h = h.reshape(B, L, H)

    for blk in params["blocks"]:
        # one fused kernel per MambaBlock (no HBM roundtrip for intermediates)
        h = mamba_block_pallas(h, blk, L=L, H=H, ED=ED,
                               dt_rank=dt_rank, Ns=Ns, Kc=Kc)

    # mean pooling over the sequence axis (tiny, left in XLA glue)
    pooled = jnp.mean(h, axis=1)                             # (B, H)

    # linear decoder + softmax over dim=1 (fused epilogue)
    return decode_softmax_pallas(pooled, params["dec_w"], params["dec_b"])


# ----------------------------------------------------------------------------
# main
# ----------------------------------------------------------------------------

if __name__ == "__main__":
    # small shapes consistent with the module's forward
    batch, seq = 2, 8
    input_dim, hidden_dim, state_dim, conv_dim, expansion = 4, 32, 8, 4, 2
    output_dim, num_blocks = 10, 2

    root = jax.random.PRNGKey(0)
    k_params, k_x = jax.random.split(root)

    params, dims = init_params(
        k_params, input_dim=input_dim, hidden_dim=hidden_dim,
        state_dim=state_dim, conv_dim=conv_dim, expansion=expansion,
        output_dim=output_dim, num_blocks=num_blocks)

    x = jax.random.normal(k_x, (batch, seq, input_dim), jnp.float32)

    fwd = jax.jit(functools.partial(mamba_forward, dims=dims))
    out = fwd(x, params)
    out = jax.block_until_ready(out)

    assert out.shape == (batch, output_dim)
    assert bool(jnp.all(jnp.isfinite(out)))
    # rows of softmax sum to 1
    assert bool(jnp.allclose(jnp.sum(out, axis=1), 1.0, atol=1e-5))
    print("KERNEL_OK")
</pallas_src>

<mosaic_0001>
module attributes {stable_mosaic.version = 11 : i64} {
  func.func @_linear_kernel(%arg0: i32, %arg1: memref<16x4xf32, #tpu.memory_space<vmem>>, %arg2: memref<4x32xbf16, #tpu.memory_space<vmem>>, %arg3: memref<1x32xf32, #tpu.memory_space<vmem>>, %arg4: memref<16x32xf32, #tpu.memory_space<vmem>>) attributes {dimension_semantics = [#tpu.dimension_semantics<parallel>], iteration_bounds = array<i64: 1>, scalar_prefetch = 0 : i64, scratch_operands = 0 : i64, tpu.core_type = #tpu.core_type<tc>, window_params = [{transform_indices = @transform_0, window_bounds = array<i64: 16, 4>}, {pipeline_mode = #tpu.pipeline_mode<synchronous>, transform_indices = @transform_1, window_bounds = array<i64: 4, 32>}, {pipeline_mode = #tpu.pipeline_mode<synchronous>, transform_indices = @transform_2, window_bounds = array<i64: 1, 32>}, {transform_indices = @transform_3, window_bounds = array<i64: 16, 32>}]} {
    %c0 = arith.constant 0 : index
    %c0_0 = arith.constant 0 : index
    %0 = vector.load %arg1[%c0, %c0_0] : memref<16x4xf32, #tpu.memory_space<vmem>>, vector<16x4xf32>
    %1 = arith.truncf %0 : vector<16x4xf32> to vector<16x4xbf16>
    %c0_1 = arith.constant 0 : index
    %c0_2 = arith.constant 0 : index
    %2 = vector.load %arg2[%c0_1, %c0_2] : memref<4x32xbf16, #tpu.memory_space<vmem>>, vector<4x32xbf16>
    %cst = arith.constant dense<0.000000e+00> : vector<16x32xf32>
    %3 = tpu.matmul %1, %2, %cst {dimension_numbers = #tpu.dot_dimension_numbers<[1], [0], [0], [1], [0, 0, 1, 1], [], []>} : vector<16x4xbf16>, vector<4x32xbf16>, vector<16x32xf32> -> vector<16x32xf32>
    %c0_3 = arith.constant 0 : index
    %c0_4 = arith.constant 0 : index
    %4 = vector.load %arg3[%c0_3, %c0_4] : memref<1x32xf32, #tpu.memory_space<vmem>>, vector<1x32xf32>
    %5 = vector.broadcast %4 : vector<1x32xf32> to vector<16x32xf32>
    %6 = arith.addf %3, %5 : vector<16x32xf32>
    %c0_5 = arith.constant 0 : index
    %c0_6 = arith.constant 0 : index
    %7 = vector.load %arg4[%c0_5, %c0_6] : memref<16x32xf32, #tpu.memory_space<vmem>>, vector<16x32xf32>
    tpu.vector_store %arg4[%c0_5, %c0_6], %6 {strides = array<i32>} : memref<16x32xf32, #tpu.memory_space<vmem>>, vector<16x32xf32>,
    return
  }
  func.func @transform_0(%arg0: i32) -> (i32, i32) {
    %c0_i32 = arith.constant 0 : i32
    %c0_i32_0 = arith.constant 0 : i32
    return %arg0, %c0_i32 : i32, i32
  }
  func.func @transform_1(%arg0: i32) -> (i32, i32) {
    %c0_i32 = arith.constant 0 : i32
    %c0_i32_0 = arith.constant 0 : i32
    %c0_i32_1 = arith.constant 0 : i32
    return %c0_i32, %c0_i32_0 : i32, i32
  }
  func.func @transform_2(%arg0: i32) -> (i32, i32) {
    %c0_i32 = arith.constant 0 : i32
    %c0_i32_0 = arith.constant 0 : i32
    %c0_i32_1 = arith.constant 0 : i32
    return %c0_i32, %c0_i32_0 : i32, i32
  }
  func.func @transform_3(%arg0: i32) -> (i32, i32) {
    %c0_i32 = arith.constant 0 : i32
    %c0_i32_0 = arith.constant 0 : i32
    return %arg0, %c0_i32 : i32, i32
  }
}

module attributes {stable_mosaic.version = 11 : i64} {
  func.func @_mamba_block_kernel(%arg0: i32, %arg1: i32, %arg2: memref<1x8x32xf32, #tpu.memory_space<vmem>>, %arg3: memref<1x32xf32, #tpu.memory_space<vmem>>, %arg4: memref<1x32xf32, #tpu.memory_space<vmem>>, %arg5: memref<32x64xbf16, #tpu.memory_space<vmem>>, %arg6: memref<32x64xbf16, #tpu.memory_space<vmem>>, %arg7: memref<4x64xf32, #tpu.memory_space<vmem>>, %arg8: memref<1x64xf32, #tpu.memory_space<vmem>>, %arg9: memref<64x2xbf16, #tpu.memory_space<vmem>>, %arg10: memref<64x8xbf16, #tpu.memory_space<vmem>>, %arg11: memref<64x8xbf16, #tpu.memory_space<vmem>>, %arg12: memref<2x64xf32, #tpu.memory_space<vmem>>, %arg13: memref<1x64xf32, #tpu.memory_space<vmem>>, %arg14: memref<8x64xf32, #tpu.memory_space<vmem>>, %arg15: memref<1x64xf32, #tpu.memory_space<vmem>>, %arg16: memref<64x32xbf16, #tpu.memory_space<vmem>>, %arg17: memref<32x32xbf16, #tpu.memory_space<vmem>>, %arg18: memref<1x32xf32, #tpu.memory_space<vmem>>, %arg19: memref<32x32xbf16, #tpu.memory_space<vmem>>, %arg20: memref<1x32xf32, #tpu.memory_space<vmem>>, %arg21: memref<1x8x32xf32, #tpu.memory_space<vmem>>, %arg22: memref<8x64xf32, #tpu.memory_space<vmem>>, %arg23: memref<3x64xf32, #tpu.memory_space<vmem>>) attributes {dimension_semantics = [#tpu.dimension_semantics<parallel>, #tpu.dimension_semantics<arbitrary>], iteration_bounds = array<i64: 2, 1>, scalar_prefetch = 0 : i64, scratch_operands = 2 : i64, tpu.core_type = #tpu.core_type<tc>, window_params = [{transform_indices = @transform_0, window_bounds = array<i64: 1, 8, 32>}, {pipeline_mode = #tpu.pipeline_mode<synchronous>, transform_indices = @transform_1, window_bounds = array<i64: 1, 32>}, {pipeline_mode = #tpu.pipeline_mode<synchronous>, transform_indices = @transform_2, window_bounds = array<i64: 1, 32>}, {pipeline_mode = #tpu.pipeline_mode<synchronous>, transform_indices = @transform_3, window_bounds = array<i64: 32, 64>}, {pipeline_mode = #tpu.pipeline_mode<synchronous>, transform_indices = @transform_4, window_bounds = array<i64: 32, 64>}, {pipeline_mode = #tpu.pipeline_mode<synchronous>, transform_indices = @transform_5, window_bounds = array<i64: 4, 64>}, {pipeline_mode = #tpu.pipeline_mode<synchronous>, transform_indices = @transform_6, window_bounds = array<i64: 1, 64>}, {pipeline_mode = #tpu.pipeline_mode<synchronous>, transform_indices = @transform_7, window_bounds = array<i64: 64, 2>}, {pipeline_mode = #tpu.pipeline_mode<synchronous>, transform_indices = @transform_8, window_bounds = array<i64: 64, 8>}, {pipeline_mode = #tpu.pipeline_mode<synchronous>, transform_indices = @transform_9, window_bounds = array<i64: 64, 8>}, {pipeline_mode = #tpu.pipeline_mode<synchronous>, transform_indices = @transform_10, window_bounds = array<i64: 2, 64>}, {pipeline_mode = #tpu.pipeline_mode<synchronous>, transform_indices = @transform_11, window_bounds = array<i64: 1, 64>}, {pipeline_mode = #tpu.pipeline_mode<synchronous>, transform_indices = @transform_12, window_bounds = array<i64: 8, 64>}, {pipeline_mode = #tpu.pipeline_mode<synchronous>, transform_indices = @transform_13, window_bounds = array<i64: 1, 64>}, {pipeline_mode = #tpu.pipeline_mode<synchronous>, transform_indices = @transform_14, window_bounds = array<i64: 64, 32>}, {pipeline_mode = #tpu.pipeline_mode<synchronous>, transform_indices = @transform_15, window_bounds = array<i64: 32, 32>}, {pipeline_mode = #tpu.pipeline_mode<synchronous>, transform_indices = @transform_16, window_bounds = array<i64: 1, 32>}, {pipeline_mode = #tpu.pipeline_mode<synchronous>, transform_indices = @transform_17, window_bounds = array<i64: 32, 32>}, {pipeline_mode = #tpu.pipeline_mode<synchronous>, transform_indices = @transform_18, window_bounds = array<i64: 1, 32>}, {transform_indices = @transform_19, window_bounds = array<i64: 1, 8, 32>}]} {
    %c0_i32 = arith.constant 0 : i32
    %0 = arith.cmpi eq, %arg1, %c0_i32 : i32
    %1 = arith.extui %0 : i1 to i32
    %c0_i32_0 = arith.constant 0 : i32
    %2 = arith.cmpi ne, %1, %c0_i32_0 : i32
    scf.if %2 {
      %cst_84 = arith.constant 0.000000e+00 : f32
      %240 = vector.broadcast %cst_84 : f32 to vector<8x64xf32>
      %c0_85 = arith.constant 0 : index
      %c0_86 = arith.constant 0 : index
      %241 = vector.load %arg22[%c0_85, %c0_86] : memref<8x64xf32, #tpu.memory_space<vmem>>, vector<8x64xf32>
      tpu.vector_store %arg22[%c0_85, %c0_86], %240 {strides = array<i32>} : memref<8x64xf32, #tpu.memory_space<vmem>>, vector<8x64xf32>,
      %cst_87 = arith.constant 0.000000e+00 : f32
      %242 = vector.broadcast %cst_87 : f32 to vector<3x64xf32>
      %c0_88 = arith.constant 0 : index
      %c0_89 = arith.constant 0 : index
      %243 = vector.load %arg23[%c0_88, %c0_89] : memref<3x64xf32, #tpu.memory_space<vmem>>, vector<3x64xf32>
      tpu.vector_store %arg23[%c0_88, %c0_89], %242 {strides = array<i32>} : memref<3x64xf32, #tpu.memory_space<vmem>>, vector<3x64xf32>,
    } else {
    }
    %c0 = arith.constant 0 : index
    %c0_1 = arith.constant 0 : index
    %c0_2 = arith.constant 0 : index
    %3 = vector.load %arg2[%c0, %c0_1, %c0_2] : memref<1x8x32xf32, #tpu.memory_space<vmem>>, vector<1x8x32xf32>
    %4 = vector.shape_cast %3 : vector<1x8x32xf32> to vector<8x32xf32>
    %cst = arith.constant dense<0.000000e+00> : vector<8xf32>
    %5 = vector.multi_reduction <add>, %4, %cst [1] : vector<8x32xf32> to vector<8xf32>
    %6 = vector.shape_cast %5 : vector<8xf32> to vector<8x1xf32>
    %cst_3 = arith.constant 3.200000e+01 : f32
    %7 = vector.broadcast %cst_3 : f32 to vector<8x1xf32>
    %8 = arith.divf %6, %7 : vector<8x1xf32>
    %9 = vector.broadcast %8 : vector<8x1xf32> to vector<8x32xf32>
    %10 = arith.subf %4, %9 : vector<8x32xf32>
    %11 = arith.mulf %10, %10 : vector<8x32xf32>
    %cst_4 = arith.constant dense<0.000000e+00> : vector<8xf32>
    %12 = vector.multi_reduction <add>, %11, %cst_4 [1] : vector<8x32xf32> to vector<8xf32>
    %13 = vector.shape_cast %12 : vector<8xf32> to vector<8x1xf32>
    %cst_5 = arith.constant 3.200000e+01 : f32
    %14 = vector.broadcast %cst_5 : f32 to vector<8x1xf32>
    %15 = arith.divf %13, %14 : vector<8x1xf32>
    %16 = vector.broadcast %8 : vector<8x1xf32> to vector<8x32xf32>
    %17 = arith.subf %4, %16 : vector<8x32xf32>
    %cst_6 = arith.constant 9.99999974E-6 : f32
    %18 = vector.broadcast %cst_6 : f32 to vector<8x1xf32>
    %19 = arith.addf %15, %18 : vector<8x1xf32>
    %20 = math.rsqrt %19 : vector<8x1xf32>
    %21 = vector.broadcast %20 : vector<8x1xf32> to vector<8x32xf32>
    %22 = arith.mulf %17, %21 : vector<8x32xf32>
    %c0_7 = arith.constant 0 : index
    %c0_8 = arith.constant 0 : index
    %23 = vector.load %arg3[%c0_7, %c0_8] : memref<1x32xf32, #tpu.memory_space<vmem>>, vector<1x32xf32>
    %24 = vector.broadcast %23 : vector<1x32xf32> to vector<8x32xf32>
    %25 = arith.mulf %22, %24 : vector<8x32xf32>
    %c0_9 = arith.constant 0 : index
    %c0_10 = arith.constant 0 : index
    %26 = vector.load %arg4[%c0_9, %c0_10] : memref<1x32xf32, #tpu.memory_space<vmem>>, vector<1x32xf32>
    %27 = vector.broadcast %26 : vector<1x32xf32> to vector<8x32xf32>
    %28 = arith.addf %25, %27 : vector<8x32xf32>
    %29 = arith.truncf %28 : vector<8x32xf32> to vector<8x32xbf16>
    %c0_11 = arith.constant 0 : index
    %c0_12 = arith.constant 0 : index
    %30 = vector.load %arg5[%c0_11, %c0_12] : memref<32x64xbf16, #tpu.memory_space<vmem>>, vector<32x64xbf16>
    %cst_13 = arith.constant dense<0.000000e+00> : vector<8x64xf32>
    %31 = tpu.matmul %29, %30, %cst_13 {dimension_numbers = #tpu.dot_dimension_numbers<[1], [0], [0], [1], [0, 0, 1, 1], [], []>} : vector<8x32xbf16>, vector<32x64xbf16>, vector<8x64xf32> -> vector<8x64xf32>
    %c0_14 = arith.constant 0 : index
    %c0_15 = arith.constant 0 : index
    %32 = vector.load %arg6[%c0_14, %c0_15] : memref<32x64xbf16, #tpu.memory_space<vmem>>, vector<32x64xbf16>
    %cst_16 = arith.constant dense<0.000000e+00> : vector<8x64xf32>
    %33 = tpu.matmul %29, %32, %cst_16 {dimension_numbers = #tpu.dot_dimension_numbers<[1], [0], [0], [1], [0, 0, 1, 1], [], []>} : vector<8x32xbf16>, vector<32x64xbf16>, vector<8x64xf32> -> vector<8x64xf32>
    %c0_17 = arith.constant 0 : index
    %c0_18 = arith.constant 0 : index
    %34 = vector.load %arg7[%c0_17, %c0_18] : memref<4x64xf32, #tpu.memory_space<vmem>>, vector<4x64xf32>
    %c0_19 = arith.constant 0 : index
    %c0_20 = arith.constant 0 : index
    %35 = vector.load %arg23[%c0_19, %c0_20] : memref<3x64xf32, #tpu.memory_space<vmem>>, vector<3x64xf32>
    %36 = tpu.concatenate %35, %31 in 0 : vector<3x64xf32>, vector<8x64xf32> -> vector<11x64xf32>
    %cst_21 = arith.constant 0.000000e+00 : f32
    %37 = vector.broadcast %cst_21 : f32 to vector<8x64xf32>
    %38 = vector.extract_strided_slice %36 {offsets = [0, 0], sizes = [8, 64], strides = [1, 1]} : vector<11x64xf32> to vector<8x64xf32>
    %39 = vector.extract_strided_slice %34 {offsets = [0, 0], sizes = [1, 64], strides = [1, 1]} : vector<4x64xf32> to vector<1x64xf32>
    %40 = vector.broadcast %39 : vector<1x64xf32> to vector<8x64xf32>
    %41 = arith.mulf %38, %40 : vector<8x64xf32>
    %42 = arith.addf %37, %41 : vector<8x64xf32>
    %43 = vector.extract_strided_slice %36 {offsets = [1, 0], sizes = [8, 64], strides = [1, 1]} : vector<11x64xf32> to vector<8x64xf32>
    %44 = vector.extract_strided_slice %34 {offsets = [1, 0], sizes = [1, 64], strides = [1, 1]} : vector<4x64xf32> to vector<1x64xf32>
    %45 = vector.broadcast %44 : vector<1x64xf32> to vector<8x64xf32>
    %46 = arith.mulf %43, %45 : vector<8x64xf32>
    %47 = arith.addf %42, %46 : vector<8x64xf32>
    %48 = vector.extract_strided_slice %36 {offsets = [2, 0], sizes = [8, 64], strides = [1, 1]} : vector<11x64xf32> to vector<8x64xf32>
    %49 = vector.extract_strided_slice %34 {offsets = [2, 0], sizes = [1, 64], strides = [1, 1]} : vector<4x64xf32> to vector<1x64xf32>
    %50 = vector.broadcast %49 : vector<1x64xf32> to vector<8x64xf32>
    %51 = arith.mulf %48, %50 : vector<8x64xf32>
    %52 = arith.addf %47, %51 : vector<8x64xf32>
    %53 = vector.extract_strided_slice %36 {offsets = [3, 0], sizes = [8, 64], strides = [1, 1]} : vector<11x64xf32> to vector<8x64xf32>
    %54 = vector.extract_strided_slice %34 {offsets = [3, 0], sizes = [1, 64], strides = [1, 1]} : vector<4x64xf32> to vector<1x64xf32>
    %55 = vector.broadcast %54 : vector<1x64xf32> to vector<8x64xf32>
    %56 = arith.mulf %53, %55 : vector<8x64xf32>
    %57 = arith.addf %52, %56 : vector<8x64xf32>
    %c0_22 = arith.constant 0 : index
    %c0_23 = arith.constant 0 : index
    %58 = vector.load %arg8[%c0_22, %c0_23] : memref<1x64xf32, #tpu.memory_space<vmem>>, vector<1x64xf32>
    %59 = vector.broadcast %58 : vector<1x64xf32> to vector<8x64xf32>
    %60 = arith.addf %57, %59 : vector<8x64xf32>
    %61 = arith.negf %60 : vector<8x64xf32>
    %62 = math.exp %61 : vector<8x64xf32>
    %cst_24 = arith.constant 1.000000e+00 : f32
    %63 = vector.broadcast %cst_24 : f32 to vector<8x64xf32>
    %64 = arith.addf %63, %62 : vector<8x64xf32>
    %65 = arith.divf %63, %64 : vector<8x64xf32>
    %66 = arith.mulf %60, %65 : vector<8x64xf32>
    %67 = arith.truncf %66 : vector<8x64xf32> to vector<8x64xbf16>
    %c0_25 = arith.constant 0 : index
    %c0_26 = arith.constant 0 : index
    %68 = vector.load %arg9[%c0_25, %c0_26] : memref<64x2xbf16, #tpu.memory_space<vmem>>, vector<64x2xbf16>
    %cst_27 = arith.constant dense<0.000000e+00> : vector<8x2xf32>
    %69 = tpu.matmul %67, %68, %cst_27 {dimension_numbers = #tpu.dot_dimension_numbers<[1], [0], [0], [1], [0, 0, 1, 1], [], []>} : vector<8x64xbf16>, vector<64x2xbf16>, vector<8x2xf32> -> vector<8x2xf32>
    %c0_28 = arith.constant 0 : index
    %c0_29 = arith.constant 0 : index
    %70 = vector.load %arg10[%c0_28, %c0_29] : memref<64x8xbf16, #tpu.memory_space<vmem>>, vector<64x8xbf16>
    %cst_30 = arith.constant dense<0.000000e+00> : vector<8x8xf32>
    %71 = tpu.matmul %67, %70, %cst_30 {dimension_numbers = #tpu.dot_dimension_numbers<[1], [0], [0], [1], [0, 0, 1, 1], [], []>} : vector<8x64xbf16>, vector<64x8xbf16>, vector<8x8xf32> -> vector<8x8xf32>
    %c0_31 = arith.constant 0 : index
    %c0_32 = arith.constant 0 : index
    %72 = vector.load %arg11[%c0_31, %c0_32] : memref<64x8xbf16, #tpu.memory_space<vmem>>, vector<64x8xbf16>
    %cst_33 = arith.constant dense<0.000000e+00> : vector<8x8xf32>
    %73 = tpu.matmul %67, %72, %cst_33 {dimension_numbers = #tpu.dot_dimension_numbers<[1], [0], [0], [1], [0, 0, 1, 1], [], []>} : vector<8x64xbf16>, vector<64x8xbf16>, vector<8x8xf32> -> vector<8x8xf32>
    %c0_34 = arith.constant 0 : index
    %c0_35 = arith.constant 0 : index
    %74 = vector.load %arg12[%c0_34, %c0_35] : memref<2x64xf32, #tpu.memory_space<vmem>>, vector<2x64xf32>
    %cst_36 = arith.constant dense<0.000000e+00> : vector<8x64xf32>
    %75 = tpu.matmul %69, %74, %cst_36 {dimension_numbers = #tpu.dot_dimension_numbers<[1], [0], [0], [1], [0, 0, 1, 1], [], []>} : vector<8x2xf32>, vector<2x64xf32>, vector<8x64xf32> -> vector<8x64xf32>
    %c0_37 = arith.constant 0 : index
    %c0_38 = arith.constant 0 : index
    %76 = vector.load %arg13[%c0_37, %c0_38] : memref<1x64xf32, #tpu.memory_space<vmem>>, vector<1x64xf32>
    %77 = vector.broadcast %76 : vector<1x64xf32> to vector<8x64xf32>
    %78 = arith.addf %75, %77 : vector<8x64xf32>
    %cst_39 = arith.constant 0.000000e+00 : f32
    %79 = vector.broadcast %cst_39 : f32 to vector<8x64xf32>
    %80 = arith.maximumf %78, %79 : vector<8x64xf32>
    %81 = math.absf %78 : vector<8x64xf32>
    %cst_40 = arith.constant 0.000000e+00 : f32
    %82 = vector.broadcast %cst_40 : f32 to vector<8x64xf32>
    %83 = arith.subf %82, %81 : vector<8x64xf32>
    %84 = math.exp %83 : vector<8x64xf32>
    %cst_41 = arith.constant 1.000000e+00 : f32
    %85 = vector.broadcast %cst_41 : f32 to vector<8x64xf32>
    %86 = arith.addf %85, %84 : vector<8x64xf32>
    %87 = math.log %86 : vector<8x64xf32>
    %88 = arith.addf %80, %87 : vector<8x64xf32>
    %c0_42 = arith.constant 0 : index
    %c0_43 = arith.constant 0 : index
    %89 = vector.load %arg14[%c0_42, %c0_43] : memref<8x64xf32, #tpu.memory_space<vmem>>, vector<8x64xf32>
    %90 = vector.shape_cast %88 : vector<8x64xf32> to vector<8x1x64xf32>
    %91 = vector.shape_cast %89 : vector<8x64xf32> to vector<1x8x64xf32>
    %92 = vector.broadcast %90 : vector<8x1x64xf32> to vector<8x8x64xf32>
    %93 = vector.broadcast %91 : vector<1x8x64xf32> to vector<8x8x64xf32>
    %94 = arith.mulf %92, %93 : vector<8x8x64xf32>
    %95 = math.exp %94 : vector<8x8x64xf32>
    %96 = vector.shape_cast %71 : vector<8x8xf32> to vector<8x8x1xf32>
    %97 = arith.mulf %88, %66 : vector<8x64xf32>
    %98 = vector.shape_cast %97 : vector<8x64xf32> to vector<8x1x64xf32>
    %99 = vector.broadcast %96 : vector<8x8x1xf32> to vector<8x8x64xf32>
    %100 = vector.broadcast %98 : vector<8x1x64xf32> to vector<8x8x64xf32>
    %101 = arith.mulf %99, %100 : vector<8x8x64xf32>
    %c0_44 = arith.constant 0 : index
    %c0_45 = arith.constant 0 : index
    %102 = vector.load %arg22[%c0_44, %c0_45] : memref<8x64xf32, #tpu.memory_space<vmem>>, vector<8x64xf32>
    %103 = vector.extract_strided_slice %95 {offsets = [0, 0, 0], sizes = [1, 8, 64], strides = [1, 1, 1]} : vector<8x8x64xf32> to vector<1x8x64xf32>
    %104 = vector.shape_cast %103 : vector<1x8x64xf32> to vector<8x64xf32>
    %105 = arith.mulf %104, %102 : vector<8x64xf32>
    %106 = vector.extract_strided_slice %101 {offsets = [0, 0, 0], sizes = [1, 8, 64], strides = [1, 1, 1]} : vector<8x8x64xf32> to vector<1x8x64xf32>
    %107 = vector.shape_cast %106 : vector<1x8x64xf32> to vector<8x64xf32>
    %108 = arith.addf %105, %107 : vector<8x64xf32>
    %109 = vector.extract_strided_slice %95 {offsets = [1, 0, 0], sizes = [1, 8, 64], strides = [1, 1, 1]} : vector<8x8x64xf32> to vector<1x8x64xf32>
    %110 = vector.shape_cast %109 : vector<1x8x64xf32> to vector<8x64xf32>
    %111 = arith.mulf %110, %108 : vector<8x64xf32>
    %112 = vector.extract_strided_slice %101 {offsets = [1, 0, 0], sizes = [1, 8, 64], strides = [1, 1, 1]} : vector<8x8x64xf32> to vector<1x8x64xf32>
    %113 = vector.shape_cast %112 : vector<1x8x64xf32> to vector<8x64xf32>
    %114 = arith.addf %111, %113 : vector<8x64xf32>
    %115 = vector.extract_strided_slice %95 {offsets = [2, 0, 0], sizes = [1, 8, 64], strides = [1, 1, 1]} : vector<8x8x64xf32> to vector<1x8x64xf32>
    %116 = vector.shape_cast %115 : vector<1x8x64xf32> to vector<8x64xf32>
    %117 = arith.mulf %116, %114 : vector<8x64xf32>
    %118 = vector.extract_strided_slice %101 {offsets = [2, 0, 0], sizes = [1, 8, 64], strides = [1, 1, 1]} : vector<8x8x64xf32> to vector<1x8x64xf32>
    %119 = vector.shape_cast %118 : vector<1x8x64xf32> to vector<8x64xf32>
    %120 = arith.addf %117, %119 : vector<8x64xf32>
    %121 = vector.extract_strided_slice %95 {offsets = [3, 0, 0], sizes = [1, 8, 64], strides = [1, 1, 1]} : vector<8x8x64xf32> to vector<1x8x64xf32>
    %122 = vector.shape_cast %121 : vector<1x8x64xf32> to vector<8x64xf32>
    %123 = arith.mulf %122, %120 : vector<8x64xf32>
    %124 = vector.extract_strided_slice %101 {offsets = [3, 0, 0], sizes = [1, 8, 64], strides = [1, 1, 1]} : vector<8x8x64xf32> to vector<1x8x64xf32>
    %125 = vector.shape_cast %124 : vector<1x8x64xf32> to vector<8x64xf32>
    %126 = arith.addf %123, %125 : vector<8x64xf32>
    %127 = vector.extract_strided_slice %95 {offsets = [4, 0, 0], sizes = [1, 8, 64], strides = [1, 1, 1]} : vector<8x8x64xf32> to vector<1x8x64xf32>
    %128 = vector.shape_cast %127 : vector<1x8x64xf32> to vector<8x64xf32>
    %129 = arith.mulf %128, %126 : vector<8x64xf32>
    %130 = vector.extract_strided_slice %101 {offsets = [4, 0, 0], sizes = [1, 8, 64], strides = [1, 1, 1]} : vector<8x8x64xf32> to vector<1x8x64xf32>
    %131 = vector.shape_cast %130 : vector<1x8x64xf32> to vector<8x64xf32>
    %132 = arith.addf %129, %131 : vector<8x64xf32>
    %133 = vector.extract_strided_slice %95 {offsets = [5, 0, 0], sizes = [1, 8, 64], strides = [1, 1, 1]} : vector<8x8x64xf32> to vector<1x8x64xf32>
    %134 = vector.shape_cast %133 : vector<1x8x64xf32> to vector<8x64xf32>
    %135 = arith.mulf %134, %132 : vector<8x64xf32>
    %136 = vector.extract_strided_slice %101 {offsets = [5, 0, 0], sizes = [1, 8, 64], strides = [1, 1, 1]} : vector<8x8x64xf32> to vector<1x8x64xf32>
    %137 = vector.shape_cast %136 : vector<1x8x64xf32> to vector<8x64xf32>
    %138 = arith.addf %135, %137 : vector<8x64xf32>
    %139 = vector.extract_strided_slice %95 {offsets = [6, 0, 0], sizes = [1, 8, 64], strides = [1, 1, 1]} : vector<8x8x64xf32> to vector<1x8x64xf32>
    %140 = vector.shape_cast %139 : vector<1x8x64xf32> to vector<8x64xf32>
    %141 = arith.mulf %140, %138 : vector<8x64xf32>
    %142 = vector.extract_strided_slice %101 {offsets = [6, 0, 0], sizes = [1, 8, 64], strides = [1, 1, 1]} : vector<8x8x64xf32> to vector<1x8x64xf32>
    %143 = vector.shape_cast %142 : vector<1x8x64xf32> to vector<8x64xf32>
    %144 = arith.addf %141, %143 : vector<8x64xf32>
    %145 = vector.extract_strided_slice %95 {offsets = [7, 0, 0], sizes = [1, 8, 64], strides = [1, 1, 1]} : vector<8x8x64xf32> to vector<1x8x64xf32>
    %146 = vector.shape_cast %145 : vector<1x8x64xf32> to vector<8x64xf32>
    %147 = arith.mulf %146, %144 : vector<8x64xf32>
    %148 = vector.extract_strided_slice %101 {offsets = [7, 0, 0], sizes = [1, 8, 64], strides = [1, 1, 1]} : vector<8x8x64xf32> to vector<1x8x64xf32>
    %149 = vector.shape_cast %148 : vector<1x8x64xf32> to vector<8x64xf32>
    %150 = arith.addf %147, %149 : vector<8x64xf32>
    %c0_46 = arith.constant 0 : index
    %c0_47 = arith.constant 0 : index
    %151 = vector.load %arg22[%c0_46, %c0_47] : memref<8x64xf32, #tpu.memory_space<vmem>>, vector<8x64xf32>
    tpu.vector_store %arg22[%c0_46, %c0_47], %150 {strides = array<i32>} : memref<8x64xf32, #tpu.memory_space<vmem>>, vector<8x64xf32>,
    %152 = vector.shape_cast %108 : vector<8x64xf32> to vector<1x8x64xf32>
    %153 = vector.shape_cast %114 : vector<8x64xf32> to vector<1x8x64xf32>
    %154 = vector.shape_cast %120 : vector<8x64xf32> to vector<1x8x64xf32>
    %155 = vector.shape_cast %126 : vector<8x64xf32> to vector<1x8x64xf32>
    %156 = vector.shape_cast %132 : vector<8x64xf32> to vector<1x8x64xf32>
    %157 = vector.shape_cast %138 : vector<8x64xf32> to vector<1x8x64xf32>
    %158 = vector.shape_cast %144 : vector<8x64xf32> to vector<1x8x64xf32>
    %159 = vector.shape_cast %150 : vector<8x64xf32> to vector<1x8x64xf32>
    %160 = tpu.concatenate %152, %153, %154, %155, %156, %157, %158, %159 in 0 : vector<1x8x64xf32>, vector<1x8x64xf32>, vector<1x8x64xf32>, vector<1x8x64xf32>, vector<1x8x64xf32>, vector<1x8x64xf32>, vector<1x8x64xf32>, vector<1x8x64xf32> -> vector<8x8x64xf32>
    %161 = vector.shape_cast %73 : vector<8x8xf32> to vector<8x8x1xf32>
    %162 = vector.broadcast %161 : vector<8x8x1xf32> to vector<8x8x64xf32>
    %163 = arith.mulf %162, %160 : vector<8x8x64xf32>
    %cst_48 = arith.constant dense<0.000000e+00> : vector<8x64xf32>
    %164 = vector.multi_reduction <add>, %163, %cst_48 [1] : vector<8x8x64xf32> to vector<8x64xf32>
    %c0_49 = arith.constant 0 : index
    %c0_50 = arith.constant 0 : index
    %165 = vector.load %arg15[%c0_49, %c0_50] : memref<1x64xf32, #tpu.memory_space<vmem>>, vector<1x64xf32>
    %166 = vector.broadcast %165 : vector<1x64xf32> to vector<8x64xf32>
    %167 = arith.mulf %166, %66 : vector<8x64xf32>
    %168 = arith.addf %164, %167 : vector<8x64xf32>
    %169 = arith.negf %33 : vector<8x64xf32>
    %170 = math.exp %169 : vector<8x64xf32>
    %cst_51 = arith.constant 1.000000e+00 : f32
    %171 = vector.broadcast %cst_51 : f32 to vector<8x64xf32>
    %172 = arith.addf %171, %170 : vector<8x64xf32>
    %173 = arith.divf %171, %172 : vector<8x64xf32>
    %174 = arith.mulf %33, %173 : vector<8x64xf32>
    %175 = arith.mulf %168, %174 : vector<8x64xf32>
    %176 = arith.truncf %175 : vector<8x64xf32> to vector<8x64xbf16>
    %c0_52 = arith.constant 0 : index
    %c0_53 = arith.constant 0 : index
    %177 = vector.load %arg16[%c0_52, %c0_53] : memref<64x32xbf16, #tpu.memory_space<vmem>>, vector<64x32xbf16>
    %cst_54 = arith.constant dense<0.000000e+00> : vector<8x32xf32>
    %178 = tpu.matmul %176, %177, %cst_54 {dimension_numbers = #tpu.dot_dimension_numbers<[1], [0], [0], [1], [0, 0, 1, 1], [], []>} : vector<8x64xbf16>, vector<64x32xbf16>, vector<8x32xf32> -> vector<8x32xf32>
    %cst_55 = arith.constant 0.707106769 : f32
    %179 = vector.broadcast %cst_55 : f32 to vector<8x32xf32>
    %180 = arith.mulf %178, %179 : vector<8x32xf32>
    %181 = math.absf %180 : vector<8x32xf32>
    %cst_56 = arith.constant 0.327591091 : f32
    %182 = vector.broadcast %cst_56 : f32 to vector<8x32xf32>
    %183 = arith.mulf %182, %181 : vector<8x32xf32>
    %cst_57 = arith.constant 1.000000e+00 : f32
    %184 = vector.broadcast %cst_57 : f32 to vector<8x32xf32>
    %185 = arith.addf %184, %183 : vector<8x32xf32>
    %cst_58 = arith.constant 1.000000e+00 : f32
    %186 = vector.broadcast %cst_58 : f32 to vector<8x32xf32>
    %187 = arith.divf %186, %185 : vector<8x32xf32>
    %cst_59 = arith.constant 1.06140542 : f32
    %188 = vector.broadcast %cst_59 : f32 to vector<8x32xf32>
    %189 = arith.mulf %187, %188 : vector<8x32xf32>
    %cst_60 = arith.constant -1.45315206 : f32
    %190 = vector.broadcast %cst_60 : f32 to vector<8x32xf32>
    %191 = arith.addf %190, %189 : vector<8x32xf32>
    %192 = arith.mulf %187, %191 : vector<8x32xf32>
    %cst_61 = arith.constant 1.42141378 : f32
    %193 = vector.broadcast %cst_61 : f32 to vector<8x32xf32>
    %194 = arith.addf %193, %192 : vector<8x32xf32>
    %195 = arith.mulf %187, %194 : vector<8x32xf32>
    %cst_62 = arith.constant -0.284496725 : f32
    %196 = vector.broadcast %cst_62 : f32 to vector<8x32xf32>
    %197 = arith.addf %196, %195 : vector<8x32xf32>
    %198 = arith.mulf %187, %197 : vector<8x32xf32>
    %cst_63 = arith.constant 0.254829586 : f32
    %199 = vector.broadcast %cst_63 : f32 to vector<8x32xf32>
    %200 = arith.addf %199, %198 : vector<8x32xf32>
    %201 = arith.mulf %187, %200 : vector<8x32xf32>
    %cst_64 = arith.constant 0.000000e+00 : f32
    %202 = vector.broadcast %cst_64 : f32 to vector<8x32xf32>
    %203 = arith.subf %202, %181 : vector<8x32xf32>
    %204 = arith.mulf %203, %181 : vector<8x32xf32>
    %205 = math.exp %204 : vector<8x32xf32>
    %206 = arith.mulf %201, %205 : vector<8x32xf32>
    %cst_65 = arith.constant 1.000000e+00 : f32
    %207 = vector.broadcast %cst_65 : f32 to vector<8x32xf32>
    %208 = arith.subf %207, %206 : vector<8x32xf32>
    %cst_66 = arith.constant 0.000000e+00 : f32
    %209 = vector.broadcast %cst_66 : f32 to vector<8x32xf32>
    %210 = arith.cmpf oge, %180, %209 : vector<8x32xf32>
    %cst_67 = arith.constant 0.000000e+00 : f32
    %211 = vector.broadcast %cst_67 : f32 to vector<8x32xf32>
    %212 = arith.subf %211, %208 : vector<8x32xf32>
    %213 = arith.select %210, %208, %212 : vector<8x32xi1>, vector<8x32xf32>
    %cst_68 = arith.constant 5.000000e-01 : f32
    %214 = vector.broadcast %cst_68 : f32 to vector<8x32xf32>
    %215 = arith.mulf %214, %178 : vector<8x32xf32>
    %cst_69 = arith.constant 1.000000e+00 : f32
    %216 = vector.broadcast %cst_69 : f32 to vector<8x32xf32>
    %217 = arith.addf %216, %213 : vector<8x32xf32>
    %218 = arith.mulf %215, %217 : vector<8x32xf32>
    %219 = arith.truncf %218 : vector<8x32xf32> to vector<8x32xbf16>
    %c0_70 = arith.constant 0 : index
    %c0_71 = arith.constant 0 : index
    %220 = vector.load %arg17[%c0_70, %c0_71] : memref<32x32xbf16, #tpu.memory_space<vmem>>, vector<32x32xbf16>
    %cst_72 = arith.constant dense<0.000000e+00> : vector<8x32xf32>
    %221 = tpu.matmul %219, %220, %cst_72 {dimension_numbers = #tpu.dot_dimension_numbers<[1], [0], [0], [1], [0, 0, 1, 1], [], []>} : vector<8x32xbf16>, vector<32x32xbf16>, vector<8x32xf32> -> vector<8x32xf32>
    %c0_73 = arith.constant 0 : index
    %c0_74 = arith.constant 0 : index
    %222 = vector.load %arg18[%c0_73, %c0_74] : memref<1x32xf32, #tpu.memory_space<vmem>>, vector<1x32xf32>
    %223 = vector.broadcast %222 : vector<1x32xf32> to vector<8x32xf32>
    %224 = arith.addf %221, %223 : vector<8x32xf32>
    %c0_75 = arith.constant 0 : index
    %c0_76 = arith.constant 0 : index
    %225 = vector.load %arg19[%c0_75, %c0_76] : memref<32x32xbf16, #tpu.memory_space<vmem>>, vector<32x32xbf16>
    %cst_77 = arith.constant dense<0.000000e+00> : vector<8x32xf32>
    %226 = tpu.matmul %219, %225, %cst_77 {dimension_numbers = #tpu.dot_dimension_numbers<[1], [0], [0], [1], [0, 0, 1, 1], [], []>} : vector<8x32xbf16>, vector<32x32xbf16>, vector<8x32xf32> -> vector<8x32xf32>
    %c0_78 = arith.constant 0 : index
    %c0_79 = arith.constant 0 : index
    %227 = vector.load %arg20[%c0_78, %c0_79] : memref<1x32xf32, #tpu.memory_space<vmem>>, vector<1x32xf32>
    %228 = vector.broadcast %227 : vector<1x32xf32> to vector<8x32xf32>
    %229 = arith.addf %226, %228 : vector<8x32xf32>
    %230 = arith.negf %229 : vector<8x32xf32>
    %231 = math.exp %230 : vector<8x32xf32>
    %cst_80 = arith.constant 1.000000e+00 : f32
    %232 = vector.broadcast %cst_80 : f32 to vector<8x32xf32>
    %233 = arith.addf %232, %231 : vector<8x32xf32>
    %234 = arith.divf %232, %233 : vector<8x32xf32>
    %235 = arith.mulf %224, %234 : vector<8x32xf32>
    %236 = arith.addf %235, %4 : vector<8x32xf32>
    %c0_81 = arith.constant 0 : index
    %c0_82 = arith.constant 0 : index
    %c0_83 = arith.constant 0 : index
    %237 = vector.load %arg21[%c0_81, %c0_82, %c0_83] : memref<1x8x32xf32, #tpu.memory_space<vmem>>, vector<1x8x32xf32>
    %238 = vector.shape_cast %237 : vector<1x8x32xf32> to vector<8x32xf32>
    %239 = vector.shape_cast %236 : vector<8x32xf32> to vector<1x8x32xf32>
    tpu.vector_store %arg21[%c0_81, %c0_82, %c0_83], %239 {strides = array<i32>} : memref<1x8x32xf32, #tpu.memory_space<vmem>>, vector<1x8x32xf32>,
    return
  }
  func.func @transform_0(%arg0: i32, %arg1: i32) -> (i32, i32, i32) {
    %c0_i32 = arith.constant 0 : i32
    %c0_i32_0 = arith.constant 0 : i32
    return %arg0, %arg1, %c0_i32 : i32, i32, i32
  }
  func.func @transform_1(%arg0: i32, %arg1: i32) -> (i32, i32) {
    %c0_i32 = arith.constant 0 : i32
    %c0_i32_0 = arith.constant 0 : i32
    %c0_i32_1 = arith.constant 0 : i32
    return %c0_i32, %c0_i32_0 : i32, i32
  }
  func.func @transform_2(%arg0: i32, %arg1: i32) -> (i32, i32) {
    %c0_i32 = arith.constant 0 : i32
    %c0_i32_0 = arith.constant 0 : i32
    %c0_i32_1 = arith.constant 0 : i32
    return %c0_i32, %c0_i32_0 : i32, i32
  }
  func.func @transform_3(%arg0: i32, %arg1: i32) -> (i32, i32) {
    %c0_i32 = arith.constant 0 : i32
    %c0_i32_0 = arith.constant 0 : i32
    %c0_i32_1 = arith.constant 0 : i32
    return %c0_i32, %c0_i32_0 : i32, i32
  }
  func.func @transform_4(%arg0: i32, %arg1: i32) -> (i32, i32) {
    %c0_i32 = arith.constant 0 : i32
    %c0_i32_0 = arith.constant 0 : i32
    %c0_i32_1 = arith.constant 0 : i32
    return %c0_i32, %c0_i32_0 : i32, i32
  }
  func.func @transform_5(%arg0: i32, %arg1: i32) -> (i32, i32) {
    %c0_i32 = arith.constant 0 : i32
    %c0_i32_0 = arith.constant 0 : i32
    %c0_i32_1 = arith.constant 0 : i32
    return %c0_i32, %c0_i32_0 : i32, i32
  }
  func.func @transform_6(%arg0: i32, %arg1: i32) -> (i32, i32) {
    %c0_i32 = arith.constant 0 : i32
    %c0_i32_0 = arith.constant 0 : i32
    %c0_i32_1 = arith.constant 0 : i32
    return %c0_i32, %c0_i32_0 : i32, i32
  }
  func.func @transform_7(%arg0: i32, %arg1: i32) -> (i32, i32) {
    %c0_i32 = arith.constant 0 : i32
    %c0_i32_0 = arith.constant 0 : i32
    %c0_i32_1 = arith.constant 0 : i32
    return %c0_i32, %c0_i32_0 : i32, i32
  }
  func.func @transform_8(%arg0: i32, %arg1: i32) -> (i32, i32) {
    %c0_i32 = arith.constant 0 : i32
    %c0_i32_0 = arith.constant 0 : i32
    %c0_i32_1 = arith.constant 0 : i32
    return %c0_i32, %c0_i32_0 : i32, i32
  }
  func.func @transform_9(%arg0: i32, %arg1: i32) -> (i32, i32) {
    %c0_i32 = arith.constant 0 : i32
    %c0_i32_0 = arith.constant 0 : i32
    %c0_i32_1 = arith.constant 0 : i32
    return %c0_i32, %c0_i32_0 : i32, i32
  }
  func.func @transform_10(%arg0: i32, %arg1: i32) -> (i32, i32) {
    %c0_i32 = arith.constant 0 : i32
    %c0_i32_0 = arith.constant 0 : i32
    %c0_i32_1 = arith.constant 0 : i32
    return %c0_i32, %c0_i32_0 : i32, i32
  }
  func.func @transform_11(%arg0: i32, %arg1: i32) -> (i32, i32) {
    %c0_i32 = arith.constant 0 : i32
    %c0_i32_0 = arith.constant 0 : i32
    %c0_i32_1 = arith.constant 0 : i32
    return %c0_i32, %c0_i32_0 : i32, i32
  }
  func.func @transform_12(%arg0: i32, %arg1: i32) -> (i32, i32) {
    %c0_i32 = arith.constant 0 : i32
    %c0_i32_0 = arith.constant 0 : i32
    %c0_i32_1 = arith.constant 0 : i32
    return %c0_i32, %c0_i32_0 : i32, i32
  }
  func.func @transform_13(%arg0: i32, %arg1: i32) -> (i32, i32) {
    %c0_i32 = arith.constant 0 : i32
    %c0_i32_0 = arith.constant 0 : i32
    %c0_i32_1 = arith.constant 0 : i32
    return %c0_i32, %c0_i32_0 : i32, i32
  }
  func.func @transform_14(%arg0: i32, %arg1: i32) -> (i32, i32) {
    %c0_i32 = arith.constant 0 : i32
    %c0_i32_0 = arith.constant 0 : i32
    %c0_i32_1 = arith.constant 0 : i32
    return %c0_i32, %c0_i32_0 : i32, i32
  }
  func.func @transform_15(%arg0: i32, %arg1: i32) -> (i32, i32) {
    %c0_i32 = arith.constant 0 : i32
    %c0_i32_0 = arith.constant 0 : i32
    %c0_i32_1 = arith.constant 0 : i32
    return %c0_i32, %c0_i32_0 : i32, i32
  }
  func.func @transform_16(%arg0: i32, %arg1: i32) -> (i32, i32) {
    %c0_i32 = arith.constant 0 : i32
    %c0_i32_0 = arith.constant 0 : i32
    %c0_i32_1 = arith.constant 0 : i32
    return %c0_i32, %c0_i32_0 : i32, i32
  }
  func.func @transform_17(%arg0: i32, %arg1: i32) -> (i32, i32) {
    %c0_i32 = arith.constant 0 : i32
    %c0_i32_0 = arith.constant 0 : i32
    %c0_i32_1 = arith.constant 0 : i32
    return %c0_i32, %c0_i32_0 : i32, i32
  }
  func.func @transform_18(%arg0: i32, %arg1: i32) -> (i32, i32) {
    %c0_i32 = arith.constant 0 : i32
    %c0_i32_0 = arith.constant 0 : i32
    %c0_i32_1 = arith.constant 0 : i32
    return %c0_i32, %c0_i32_0 : i32, i32
  }
  func.func @transform_19(%arg0: i32, %arg1: i32) -> (i32, i32, i32) {
    %c0_i32 = arith.constant 0 : i32
    %c0_i32_0 = arith.constant 0 : i32
    return %arg0, %arg1, %c0_i32 : i32, i32, i32
  }
}

module attributes {stable_mosaic.version = 11 : i64} {
  func.func @_decode_softmax_kernel(%arg0: i32, %arg1: memref<2x32xf32, #tpu.memory_space<vmem>>, %arg2: memref<32x10xbf16, #tpu.memory_space<vmem>>, %arg3: memref<1x10xf32, #tpu.memory_space<vmem>>, %arg4: memref<2x10xf32, #tpu.memory_space<vmem>>) attributes {dimension_semantics = [#tpu.dimension_semantics<parallel>], iteration_bounds = array<i64: 1>, scalar_prefetch = 0 : i64, scratch_operands = 0 : i64, tpu.core_type = #tpu.core_type<tc>, window_params = [{pipeline_mode = #tpu.pipeline_mode<synchronous>, transform_indices = @transform_0, window_bounds = array<i64: 2, 32>}, {pipeline_mode = #tpu.pipeline_mode<synchronous>, transform_indices = @transform_1, window_bounds = array<i64: 32, 10>}, {pipeline_mode = #tpu.pipeline_mode<synchronous>, transform_indices = @transform_2, window_bounds = array<i64: 1, 10>}, {pipeline_mode = #tpu.pipeline_mode<synchronous>, transform_indices = @transform_3, window_bounds = array<i64: 2, 10>}]} {
    %c0 = arith.constant 0 : index
    %c0_0 = arith.constant 0 : index
    %0 = vector.load %arg1[%c0, %c0_0] : memref<2x32xf32, #tpu.memory_space<vmem>>, vector<2x32xf32>
    %1 = arith.truncf %0 : vector<2x32xf32> to vector<2x32xbf16>
    %c0_1 = arith.constant 0 : index
    %c0_2 = arith.constant 0 : index
    %2 = vector.load %arg2[%c0_1, %c0_2] : memref<32x10xbf16, #tpu.memory_space<vmem>>, vector<32x10xbf16>
    %cst = arith.constant dense<0.000000e+00> : vector<2x10xf32>
    %3 = tpu.matmul %1, %2, %cst {dimension_numbers = #tpu.dot_dimension_numbers<[1], [0], [0], [1], [0, 0, 1, 1], [], []>} : vector<2x32xbf16>, vector<32x10xbf16>, vector<2x10xf32> -> vector<2x10xf32>
    %c0_3 = arith.constant 0 : index
    %c0_4 = arith.constant 0 : index
    %4 = vector.load %arg3[%c0_3, %c0_4] : memref<1x10xf32, #tpu.memory_space<vmem>>, vector<1x10xf32>
    %5 = vector.broadcast %4 : vector<1x10xf32> to vector<2x10xf32>
    %6 = arith.addf %3, %5 : vector<2x10xf32>
    %cst_5 = arith.constant dense<0xFF800000> : vector<2xf32>
    %7 = vector.multi_reduction <maximumf>, %6, %cst_5 [1] : vector<2x10xf32> to vector<2xf32>
    %8 = vector.shape_cast %7 : vector<2xf32> to vector<2x1xf32>
    %9 = vector.broadcast %8 : vector<2x1xf32> to vector<2x10xf32>
    %10 = arith.subf %6, %9 : vector<2x10xf32>
    %11 = math.exp %10 : vector<2x10xf32>
    %cst_6 = arith.constant dense<0.000000e+00> : vector<2xf32>
    %12 = vector.multi_reduction <add>, %11, %cst_6 [1] : vector<2x10xf32> to vector<2xf32>
    %13 = vector.shape_cast %12 : vector<2xf32> to vector<2x1xf32>
    %14 = vector.broadcast %13 : vector<2x1xf32> to vector<2x10xf32>
    %15 = arith.divf %11, %14 : vector<2x10xf32>
    %c0_7 = arith.constant 0 : index
    %c0_8 = arith.constant 0 : index
    %16 = vector.load %arg4[%c0_7, %c0_8] : memref<2x10xf32, #tpu.memory_space<vmem>>, vector<2x10xf32>
    tpu.vector_store %arg4[%c0_7, %c0_8], %15 {strides = array<i32>} : memref<2x10xf32, #tpu.memory_space<vmem>>, vector<2x10xf32>,
    return
  }
  func.func @transform_0(%arg0: i32) -> (i32, i32) {
    %c0_i32 = arith.constant 0 : i32
    %c0_i32_0 = arith.constant 0 : i32
    %c0_i32_1 = arith.constant 0 : i32
    return %c0_i32, %c0_i32_0 : i32, i32
  }
  func.func @transform_1(%arg0: i32) -> (i32, i32) {
    %c0_i32 = arith.constant 0 : i32
    %c0_i32_0 = arith.constant 0 : i32
    %c0_i32_1 = arith.constant 0 : i32
    return %c0_i32, %c0_i32_0 : i32, i32
  }
  func.func @transform_2(%arg0: i32) -> (i32, i32) {
    %c0_i32 = arith.constant 0 : i32
    %c0_i32_0 = arith.constant 0 : i32
    %c0_i32_1 = arith.constant 0 : i32
    return %c0_i32, %c0_i32_0 : i32, i32
  }
  func.func @transform_3(%arg0: i32) -> (i32, i32) {
    %c0_i32 = arith.constant 0 : i32
    %c0_i32_0 = arith.constant 0 : i32
    %c0_i32_1 = arith.constant 0 : i32
    return %c0_i32, %c0_i32_0 : i32, i32
  }
}

</mosaic_0001>

<bundles_post_ra>
// kernel: mamba_forward.7
= control target key start
LH: loop header
LB: loop body
LE: loop exit
PB: predicated region body
PF: predicated region fallthrough
CT: control target
= control target key end

     0   :  { %v160_v1 = vmov 0.0   ;;  %vm161_vm0 = vmmov 0   ;;  %s210_s0 = inlined_call_operand.vmem [shape: f32[2,32], index: 0, kind: input, shape index: {}]   ;;  %s211_s1 = inlined_call_operand.vmem [shape: bf16[32,10], index: 1, kind: input, shape index: {}]   ;;  %s212_s2 = inlined_call_operand.vmem [shape: f32[1,10], index: 2, kind: input, shape index: {}]   ;;  %s213_s3 = inlined_call_operand.hbm [shape: f32[2,10], index: 3, kind: output, shape index: {}]  }
   0x1   :  { %v130_v0 = vld [vmem:[%s211_s1] sm:$0xff]   ;;  %119 = vmatprep.subr.bf16.mxu0 %v160_v1  ;;  %v131_v2 = vld [vmem:[%s211_s1 + $0x8] sm:$0xff]   ;;  %123 = vmatprep.mubr.msk.bf16.mxu0 %vm161_vm0, %v160_v1 }
   0x2   :  { %120 = vmatpush3.bf16.msra.mxu0 %v130_v0  ;;  %v16_v3 = vld [vmem:[%s210_s0] sm:$0x3] }
   0x3   :  { %121 = vmatprep.subr.bf16.mxu0 %v160_v1 }
   0x4   :  { %8 = vsyncpa [#allocation3], 0  ;;  %v17_v4 = vpack.c.bf16 %v16_v3, %v16_v3  ;;  %vm41_vm1 = vcmask 261120   ;;  %v112_v5 = vld [vmem:[%s212_s2] ss:$0 sm:$0xff]  ;;  %vm85_vm2 = vcmask 74752  }
   0x5   :  { %s162_s0 = smov [#allocation2]  }
   0x6   :  { %122 = vmatpush3.bf16.msra.mxu0 %v131_v2  ;;  %s104_s1 = sshll.u32 %s162_s0, 4  ;;  %s105_s1 = int_to_ptr.vmem [resolvable:$true] %s104_s1 }
   0x7   :  { %s136_s2 = scalar_lea.vmem %s105_s1, 32  ;;  %p141_p1 = scmp.lt.s32.totalorder %s105_s1, %s105_s1 }
   0x8   :  { %p137_p0 = scmp.ne.s32.totalorder %s105_s1, %s136_s2  ;;  %p142_p2 = scmp.lt.s32.totalorder %s136_s2, %s136_s2 }
   0x9   :  { %124 = vmatmul.mubr.msk.bf16.vlgmr.msra.gmra.mrb[0].mxu0 %vm41_vm1, %v17_v4 }
   0xa   :  { %p143_p3 = por %p142_p2, %p141_p1 }
   0xc   :  { %p144_p4 = pnand %p143_p3, %p137_p0 }
  0xdc   :  { %v79_v6 = vpop.f32.mrb[0].mxu0 }
  0xdd   :  { %v80_v7 = vadd.f32 %v112_v5, %v79_v6  ;;  %v125_v8 = vpop.f32.mrb[1].mxu0 }
  0xde   :  { %v82_v9 = vpop.f32.mrb[2].mxu0 }
  0xdf   :  { %v126_v10 = vpop.f32.mrb[3].mxu0  ;;  %v86_v11 = vsel %vm85_vm2, %v80_v7, -inf }
  0xe0   :  { %87 = vmax.xlane.f32.xlu0 %v86_v11 }
 0x16d   :  { %v88_v12 = vpop.xlane.xlu0 %87 }
 0x16e   :  { %v89_v13 = vsub.f32 %v80_v7, %v88_v12 }
 0x170   :  { %v90_v14 = vmul.f32 1.442695, %v89_v13 }
 0x172   :  { %132 = vpow2.f32 %v90_v14 }
 0x17c   :  { %v133_v15 = vpop.eup %132 }
 0x17d   :  { %v92_v16 = vsel %vm85_vm2, %v133_v15, 0.0 }
 0x17e   :  { %93 = vadd.xlane.f32.xlu0 %v92_v16 }
 0x20b   :  { %v94_v17 = vpop.xlane.xlu0 %93 }
 0x20c   :  { %134 = vrcp.f32 %v94_v17 }
 0x216   :  { %v135_v18 = vpop.eup %134 }
 0x217   :  { %v96_v19 = vmul.f32 %v135_v18, %v133_v15 }
 0x219   :  { %97 = vst.msk [vmem:[#allocation2] sm:$0x3] %vm85_vm2, %v96_v19 }
 0x21a   :  { %147 = shalt.err (!%p144_p4)
}
 0x21b   :  { %s148_s22 = scalar_lea.hbm %s213_s3, 32 }
 0x21c   :  { %p149_p5 = scmp.ne.s32.totalorder %s213_s3, %s148_s22  ;;  %p152_p6 = scmp.lt.u32.totalorder %s148_s22, %s213_s3 }
 0x21e   :  { %p154_p7 = pnand %p152_p6, %p149_p5 }
 0x220   :  { %157 = shalt.err (!%p154_p7)
}
 0x221   :  { %107 = dma.vmem_to_hbm [thread:$0]  %s105_s1, 32, %s213_s3, [#allocation3]  }
 0x222   :  { %158 = dma.done.wait [#allocation3], 32  }
 0x223   :  { %159 = vsyncadd [#allocation3], 4294967264 }
 0x224   :  { %111 = vsyncpa [#allocation3], 1 }

// kernel: mamba_forward.4
= control target key start
LH: loop header
LB: loop body
LE: loop exit
PB: predicated region body
PF: predicated region fallthrough
CT: control target
= control target key end

     0   :  { %vm30_vm0 = vcmask 1041408   ;;  %v94_v0 = vmov 0.0   ;;  %vm95_vm1 = vmmov 0   ;;  %vm26_vm2 = vcmask 31744   ;;  %s134_s1 = inlined_call_operand.vmem [shape: bf16[4,32], index: 1, kind: input, shape index: {}]   ;;  %s135_s0 = inlined_call_operand.vmem [shape: f32[16,4], index: 0, kind: input, shape index: {}]   ;;  %s136_s2 = inlined_call_operand.vmem [shape: f32[1,32], index: 2, kind: input, shape index: {}]   ;;  %s137_s3 = inlined_call_operand.vmem [shape: f32[16,32], index: 3, kind: output, shape index: {}]  }
   0x1   :  { %86 = vmatprep.subr.bf16.mxu0 %v94_v0  ;;  %v18_v1 = vld [vmem:[%s134_s1] sm:$0x3]  ;;  %88 = vmatprep.mubr.msk.bf16.mxu0 %vm95_vm1, %v94_v0  ;;  %v16_v3 = vld [vmem:[%s135_s0 + $0x8] sm:$0xff]  ;;  %vm75_vm3 = vcmask 261120  }
   0x2   :  { %v15_v2 = vld [vmem:[%s135_s0] sm:$0xff]  ;;  %v32_v4 = vsel %vm30_vm0, %v18_v1, 0 }
   0x3   :  { %v17_v5 = vpack.c.bf16 %v16_v3, %v15_v2  ;;  %87 = vmatpush3.bf16.msra.mxu0 %v32_v4  ;;  %v82_v6 = vld [vmem:[%s136_s2] ss:$0 sm:$0xff] }
   0x6   :  { %89 = vmatmul.mubr.msk.bf16.vlgmr.msra.gmra.mrb[0].mxu0 %vm26_vm2, %v17_v5 }
  0xd9   :  { %v68_v7 = vpop.f32.mrb[0].mxu0 }
  0xda   :  { %v69_v8 = vadd.f32 %v82_v6, %v68_v7  ;;  %v90_v9 = vpop.f32.mrb[1].mxu0 }
  0xdb   :  { %v71_v10 = vpop.f32.mrb[2].mxu0 }
  0xdc   :  { %76 = vst.msk [vmem:[%s137_s3] sm:$0xff] %vm75_vm3, %v69_v8  ;;  %v72_v11 = vadd.f32 %v82_v6, %v71_v10  ;;  %v91_v12 = vpop.f32.mrb[3].mxu0 }
  0xde   :  { %77 = vst.msk [vmem:[%s137_s3 + $0x8] sm:$0xff] %vm75_vm3, %v72_v11 }

// kernel: mamba_forward.5
= control target key start
LH: loop header
LB: loop body
LE: loop exit
PB: predicated region body
PF: predicated region fallthrough
CT: control target
= control target key end

     0   :  { %s2395_s30 = smov 0   ;;  %s2397_s20 = smov 0   ;;  %s2736_s0 = inlined_call_operand.vmem [shape: f32[2,8,32], index: 0, kind: input, shape index: {}]   ;;  %s2737_s1 = inlined_call_operand.vmem [shape: f32[1,32], index: 1, kind: input, shape index: {}]   ;;  %s2738_s2 = inlined_call_operand.vmem [shape: f32[1,32], index: 2, kind: input, shape index: {}]   ;;  %s2739_s3 = inlined_call_operand.vmem [shape: bf16[32,64], index: 3, kind: input, shape index: {}]   ;;  %s2740_s4 = inlined_call_operand.vmem [shape: bf16[32,64], index: 4, kind: input, shape index: {}]   ;;  %s2741_s5 = inlined_call_operand.vmem [shape: f32[4,64], index: 5, kind: input, shape index: {}]   ;;  %s2742_s6 = inlined_call_operand.vmem [shape: f32[1,64], index: 6, kind: input, shape index: {}]   ;;  %s2743_s7 = inlined_call_operand.vmem [shape: bf16[64,2], index: 7, kind: input, shape index: {}]   ;;  %s2744_s8 = inlined_call_operand.vmem [shape: bf16[64,8], index: 8, kind: input, shape index: {}]   ;;  %s2745_s9 = inlined_call_operand.vmem [shape: bf16[64,8], index: 9, kind: input, shape index: {}]   ;;  %s2746_s10 = inlined_call_operand.vmem [shape: f32[2,64], index: 10, kind: input, shape index: {}]   ;;  %s2747_s11 = inlined_call_operand.vmem [shape: f32[1,64], index: 11, kind: input, shape index: {}]   ;;  %s2748_s12 = inlined_call_operand.vmem [shape: f32[8,64], index: 12, kind: input, shape index: {}]   ;;  %s2749_s13 = inlined_call_operand.vmem [shape: f32[1,64], index: 13, kind: input, shape index: {}]   ;;  %s2750_s14 = inlined_call_operand.vmem [shape: bf16[64,32], index: 14, kind: input, shape index: {}]   ;;  %s2751_s15 = inlined_call_operand.vmem [shape: bf16[32,32], index: 15, kind: input, shape index: {}]   ;;  %s2752_s16 = inlined_call_operand.vmem [shape: f32[1,32], index: 16, kind: input, shape index: {}]   ;;  %s2753_s17 = inlined_call_operand.vmem [shape: bf16[32,32], index: 17, kind: input, shape index: {}]   ;;  %s2754_s18 = inlined_call_operand.vmem [shape: f32[1,32], index: 18, kind: input, shape index: {}]   ;;  %s2755_s19 = inlined_call_operand.vmem [shape: f32[2,8,32], index: 19, kind: output, shape index: {}]  }
   0x1   :  { %2757 = sst [smem:[#allocation4_spill]] %s2736_s0  ;;  %s2393_s0 = smov 0  }
   0x2   :  { %2758 = sst [smem:[#allocation5_spill]] %s2737_s1 }
   0x3   :  { %2759 = sst [smem:[#allocation6_spill]] %s2738_s2 }
   0x4   :  { %2760 = sst [smem:[#allocation7_spill]] %s2739_s3 }
   0x5 LB: > { %s41_s21 = sadd.s32 1, %s2284_s30  ;;  %p2008_p0 = scmp.ge.s32.totalorder %s2288_s20, 1  ;;  %s2288_s20 = sphi %s2397_s20, %s29_s20   ;;  %s2284_s30 = sphi %s2395_s30, %s2766_s30   ;;  %s2280_s0 = sphi %s2393_s0, %s2765_s0  }
   0x6   : > { %p43_p1 = scmp.ge.s32.totalorder %s41_s21, 2  ;;  %p555_p2 = scmp.lt.s32.totalorder %s2288_s20, 3 }
   0x8   : > { %s2768_s21 = smov (%p43_p1, %s41_s21), 0  ;;  %p556_p3 = pnand %p2008_p0, %p555_p2 }
   0x9   : > { %p615_p4 = scmp.lt.s32.totalorder (!%p556_p3), %s2280_s0, 1  ;;  %vm639_vm0 = vcmask (!%p556_p3), 261120   ;;  %s2761_s23 = sld [smem:[#allocation4_spill]] (!%p556_p3)  ;;  %v2204_v8 = vld [vmem:[%s2740_s4] sm:$0xff] (!%p556_p3)   ;;  %v2290_v9 = vmov (!%p556_p3), 0.0   ;;  %v2206_v11 = vld [vmem:[%s2740_s4 + $0x8] sm:$0xff] (!%p556_p3)   ;;  %v793_v30 = vlaneseq (!%p556_p3) }
   0xa   : > { %559 = sbr.rel (%p556_p3) target bundleno = 1650 (0x672), region = 96  ;;  %s2762_s26 = sld [smem:[#allocation7_spill]] (!%p556_p3)  ;;  %2091 = vmatprep.subr.bf16.mxu0 (!%p556_p3), %v2290_v9  ;;  %2099 = vmatprep.subr.bf16.mxu1 (!%p556_p3), %v2290_v9  ;;  %vm2291_vm1 = vmmov (!%p556_p3), 0   ;;  %vm636_vm2 = vcmask (!%p556_p3), 518144   ;;  %v2207_v22 = vld [vmem:[%s2743_s7] sm:$0xff] (!%p556_p3)   ;;  %vm634_vm3 = vcmask (!%p556_p3), 523264  }
   0xb   : > { %2100 = vmatpush3.bf16.msra.mxu1 (!%p556_p3), %v2204_v8  ;;  %2095 = vmatprep.mubr.msk.bf16.mxu0 (!%p556_p3), %vm2291_vm1, %v2290_v9  ;;  %637 = vst.msk [vmem:[#allocation3] sm:$0x7] (!%p556_p3), %vm636_vm2, %v2290_v9  ;;  %s2763_s27 = sld [smem:[#allocation5_spill]] (!%p556_p3)  ;;  %s2764_s22 = sld [smem:[#allocation6_spill]] (!%p556_p3)  ;;  %v2208_v23 = vld [vmem:[%s2744_s8] sm:$0xff] (!%p556_p3)   ;;  %v2209_v24 = vld [vmem:[%s2743_s7 + $0x8] sm:$0xff] (!%p556_p3)  }
   0xc   : > { %2101 = vmatprep.subr.bf16.mxu1 (!%p556_p3), %v2290_v9  ;;  %2103 = vmatprep.mubr.msk.bf16.mxu1 (!%p556_p3), %vm2291_vm1, %v2290_v9  ;;  %635 = vst.msk [vmem:[#allocation2] sm:$0xff] (!%p556_p3), %vm634_vm3, %v2290_v9  ;;  %v2210_v25 = vld [vmem:[%s2744_s8 + $0x8] sm:$0xff] (!%p556_p3)   ;;  %v2211_v26 = vld [vmem:[%s2743_s7 + $0x10] sm:$0xff] (!%p556_p3)   ;;  %v2213_v28 = vld [vmem:[%s2743_s7 + $0x18] sm:$0xff] (!%p556_p3)   ;;  %v2493_v31 = vshrl.u32 (!%p556_p3), %v793_v30, 7  ;;  %vm791_vm4 = vcmask (!%p556_p3), 1042432  }
   0xd   : > { %v2212_v27 = vld [vmem:[%s2744_s8 + $0x10] sm:$0xff] (!%p556_p3)   ;;  %v2214_v29 = vld [vmem:[%s2744_s8 + $0x18] sm:$0xff] (!%p556_p3)   ;;  %v786_v34 = vld [vmem:[%s2741_s5] sm:$0xf] (!%p556_p3)  ;;  %vm807_vm5 = vcmask (!%p556_p3), 1046528   ;;  %vm821_vm6 = vcmask (!%p556_p3), 1045504  }
   0xe   : > { %v2496_v32 = vsub.s32 (!%p556_p3), 1, %v2493_v31  ;;  %v2499_v33 = vsub.s32 (!%p556_p3), 2, %v2493_v31  ;;  %v2505_v35 = vsub.s32 (!%p556_p3), 3, %v2493_v31  ;;  %v2508_v36 = vsub.s32 (!%p556_p3), 0, %v2493_v31 }
   0xf   : > { %2102 = vmatpush3.bf16.msra.mxu1 (!%p556_p3), %v2206_v11  ;;  %vm835_vm7 = vcmask (!%p556_p3), 1044480   ;;  %vm1089_vm8 = vcmask (!%p556_p3), 1041408   ;;  %vm1085_vm9 = vcmask (!%p556_p3), 15360   ;;  %vm1676_vm10 = vcmask (!%p556_p3), 1041409  }
  0x10   : > { %v2203_v7 = vld [vmem:[%s2762_s26] sm:$0xff] (!%p556_p3)   ;;  %v2205_v10 = vld [vmem:[%s2762_s26 + $0x8] sm:$0xff] (!%p556_p3)   ;;  %2119 = vmatprep.subr.bf16.mxu1 (!%p556_p3), %v2290_v9  ;;  %v802_v37 = vrot.slane (!%p556_p3), %v786_v34, %v2496_v32  ;;  %v816_v38 = vrot.slane (!%p556_p3), %v786_v34, %v2499_v33  ;;  %v830_v41 = vrot.slane (!%p556_p3), %v786_v34, %v2505_v35  ;;  %v796_v49 = vrot.slane (!%p556_p3), %v786_v34, %v2508_v36 }
  0x11   : > { %s2770_s0 = smov (!%p615_p4, %s2280_s0), 1  ;;  %2092 = vmatpush3.bf16.msra.mxu0 %v2203_v7  ;;  %v2011_v16 = vld [vmem:[%s2763_s27] ss:$0 sm:$0xff]  ;;  %vm1679_vm11 = vcmask 1042434   ;;  %vm1682_vm12 = vcmask 1043459   ;;  %vm1685_vm13 = vcmask 1044484  }
  0x12   : > { %s2009_s1 = sshll.u32 %s2770_s0, 3  ;;  %2093 = vmatprep.subr.bf16.mxu0 %v2290_v9  ;;  %v2012_v18 = vld [vmem:[%s2764_s22] ss:$0 sm:$0xff]  ;;  %v787_v40 = vld [vmem:[#allocation3] sm:$0x7]  ;;  %vm1688_vm14 = vcmask 1045509  }
  0x13   : > { %s2419_s24 = scalar_lea.vmem %s2761_s23, %s2009_s1  ;;  %vm1691_vm15 = vcmask 1046534   ;;  %vm1694_vm2 = vcmask 1047559   ;;  %s628_s25 = scalar_lea.vmem %s2755_s19, %s2009_s1 }
  0x14   : > { %v638_v0 = vld [vmem:[%s2419_s24] sm:$0xff] }
  0x15   : > { %v640_v1 = vsel %vm639_vm0, %v638_v0, 0.0  ;;  %2094 = vmatpush3.bf16.msra.mxu0 %v2205_v10 }
  0x16   : > { %641 = vadd.xlane.f32.xlu0 %v640_v1  ;;  %2107 = vmatprep.subr.bf16.mxu0 %v2290_v9 }
  0xa3   : > { %v642_v2 = vpop.xlane.xlu0 %641 }
  0xa4   : > { %v644_v3 = vmul.f32 0.03125, %v642_v2 }
  0xa6   : > { %v645_v4 = vsub.f32 %v638_v0, %v644_v3 }
  0xa8   : > { %v646_v5 = vmul.f32 %v645_v4, %v645_v4 }
  0xaa   : > { %v647_v6 = vsel %vm639_vm0, %v646_v5, 0.0 }
  0xab   : > { %648 = vadd.xlane.f32.xlu0 %v647_v6  ;;  %v2019_v6 = vld [vmem:[%s2742_s6] ss:$0 sm:$0xff] }
 0x138   : > { %v649_v12 = vpop.xlane.xlu0 %648 }
 0x139   : > { %v650_v13 = vmul.f32 0.03125, %v649_v12 }
 0x13b   : > { %v651_v14 = vadd.f32 1e-05, %v650_v13 }
 0x13d   : > { %2227 = vrsqrt.f32 %v651_v14 }
 0x147   : > { %v2228_v15 = vpop.eup %2227 }
 0x148   : > { %v653_v17 = vmul.f32 %v2228_v15, %v645_v4  ;;  %v2215_v15 = vld [vmem:[%s2745_s9] sm:$0xff]  }
 0x14a   : > { %v661_v19 = vmul.f32 %v2011_v16, %v653_v17  ;;  %v1077_v17 = vld [vmem:[%s2746_s10] sm:$0x3] }
 0x14c   : > { %v669_v20 = vadd.f32 %v2012_v18, %v661_v19  ;;  %v2216_v18 = vld [vmem:[%s2745_s9 + $0x8] sm:$0xff]   ;;  %v2217_v19 = vld [vmem:[%s2745_s9 + $0x10] sm:$0xff]  }
 0x14e   : > { %v670_v21 = vpack.c.bf16 %v669_v20, %v669_v20  ;;  %v2218_v20 = vld [vmem:[%s2745_s9 + $0x18] sm:$0xff]  }
 0x150   : > { %2096 = vmatmul.mubr.msk.bf16.vlgmr.msra.gmra.mrb[0].mxu0 %vm639_vm0, %v670_v21  ;;  %2104 = vmatmul.mubr.msk.bf16.vlgmr.msra.gmra.mrb[0].mxu1 %vm639_vm0, %v670_v21 }
 0x151   : > { %2115 = vmatprep.mubr.msk.bf16.mxu0 %vm2291_vm1, %v2290_v9  ;;  %2127 = vmatprep.mubr.msk.bf16.mxu1 %vm2291_vm1, %v2290_v9 }
 0x152   : > { %2108 = vmatpush3.bf16.msra.mxu0 %v2207_v22  ;;  %2120 = vmatpush3.bf16.msra.mxu1 %v2208_v23 }
 0x153   : > { %2109 = vmatprep.subr.bf16.mxu0 %v2290_v9  ;;  %2121 = vmatprep.subr.bf16.mxu1 %v2290_v9 }
 0x156   : > { %2110 = vmatpush3.bf16.msra.mxu0 %v2209_v24  ;;  %2122 = vmatpush3.bf16.msra.mxu1 %v2210_v25 }
 0x157   : > { %2111 = vmatprep.subr.bf16.mxu0 %v2290_v9  ;;  %2123 = vmatprep.subr.bf16.mxu1 %v2290_v9 }
 0x15a   : > { %2112 = vmatpush3.bf16.msra.mxu0 %v2211_v26  ;;  %2124 = vmatpush3.bf16.msra.mxu1 %v2212_v27  ;;  %v1338_v27 = vsub.s32 7, %v2493_v31 }
 0x15b   : > { %2113 = vmatprep.subr.bf16.mxu0 %v2290_v9  ;;  %2125 = vmatprep.subr.bf16.mxu1 %v2290_v9 }
 0x15e   : > { %2114 = vmatpush3.bf16.msra.mxu0 %v2213_v28  ;;  %2126 = vmatpush3.bf16.msra.mxu1 %v2214_v29 }
 0x15f   : > { %2131 = vmatprep.subr.bf16.mxu0 %v2290_v9  ;;  %2143 = vmatprep.subr.mxu1 %v2290_v9 }
 0x223   : > { %v724_v39 = vpop.f32.mrb[0].mxu0  ;;  %v2513_v42 = vpop.f32.mrb[0].mxu1 }
 0x224   : > { %v789_v43 = vrot.slane %v724_v39, 5  ;;  %v2097_v44 = vpop.f32.mrb[1].mxu0  ;;  %v2105_v45 = vpop.f32.mrb[1].mxu1 }
 0x225   : > { %v727_v46 = vpop.f32.mrb[2].mxu0  ;;  %v783_v47 = vpop.f32.mrb[2].mxu1 }
 0x226   : > { %v792_v48 = vsel %vm791_vm4, %v787_v40, %v789_v43  ;;  %v804_v50 = vmul.f32 %v802_v37, %v789_v43  ;;  %v818_v51 = vmul.f32 %v816_v38, %v789_v43  ;;  %v2098_v52 = vpop.f32.mrb[3].mxu0  ;;  %v2106_v53 = vpop.f32.mrb[3].mxu1  ;;  %v832_v57 = vmul.f32 %v830_v41, %v789_v43 }
 0x227   : > { %v803_v54 = vmul.f32 %v802_v37, %v792_v48  ;;  %v817_v55 = vmul.f32 %v816_v38, %v792_v48  ;;  %v831_v56 = vmul.f32 %v830_v41, %v792_v48  ;;  %v797_v62 = vmul.f32 %v796_v49, %v792_v48 }
 0x228   : > { %v809_v58 = vrot.slane %v804_v50, 1  ;;  %v823_v61 = vrot.slane %v818_v51, 2  ;;  %v837_v1 = vrot.slane %v832_v57, 3  ;;  %v1317_v40 = vsub.s32 4, %v2493_v31 }
 0x229   : > { %v808_v59 = vrot.slane %v803_v54, 1  ;;  %v822_v60 = vrot.slane %v817_v55, 2  ;;  %v836_v0 = vrot.slane %v831_v56, 3  ;;  %v1324_v43 = vsub.s32 5, %v2493_v31 }
 0x22a   : > { %v1331_v48 = vsub.s32 6, %v2493_v31 }
 0x22b   : > { %v810_v63 = vsel %vm807_vm5, %v808_v59, %v809_v58  ;;  %v824_v3 = vsel %vm821_vm6, %v822_v60, %v823_v61  ;;  %v838_v5 = vsel %vm835_vm7, %v836_v0, %v837_v1  ;;  %v2219_v58 = vld [vmem:[%s2750_s14] sm:$0xff]   ;;  %v2222_v59 = vld [vmem:[%s2750_s14 + $0x18] sm:$0xff]  }
 0x22c   : > { %v812_v2 = vadd.f32 %v810_v63, %v797_v62  ;;  %v2036_v60 = vld [vmem:[%s2747_s11] ss:$0 sm:$0xff] }
 0x22e   : > { %v826_v4 = vadd.f32 %v824_v3, %v812_v2 }
 0x230   : > { %v840_v7 = vadd.f32 %v838_v5, %v826_v4 }
 0x232   : > { %v848_v8 = vadd.f32 %v2019_v6, %v840_v7  ;;  %v2292_v7 = vmov 1966171168  }
 0x234   : > { %v2020_v10 = vmul.f32 -1.442695, %v848_v8 }
 0x236   : > { %2229 = vpow2.f32 %v2020_v10 }
 0x240   : > { %v2230_v11 = vpop.eup %2229 }
 0x241   : > { %v852_v12 = vadd.f32 1.0, %v2230_v11 }
 0x243   : > { %2231 = vrcp.f32 %v852_v12  ;;  %v2040_v12 = vmul.f32 -1.442695, %v2513_v42 }
 0x24d   : > { %v2232_v13 = vpop.eup %2231 }
 0x24e   : > { %v2519_v14 = vmul.f32 %v2232_v13, %v848_v8  ;;  %v1176_v8 = vunpack.c.l.s4 %v2292_v7 }
 0x250   : > { %v856_v16 = vpack.c.bf16 %v2519_v14, %v2519_v14  ;;  %v1177_v11 = vunpack.c.0.s8 %v1176_v8 }
 0x252   : > { %2116 = vmatmul.mubr.msk.bf16.vlgmr.msra.gmra.mrb[4].mxu0 %vm634_vm3, %v856_v16  ;;  %2128 = vmatmul.mubr.msk.bf16.vlgmr.msra.gmra.mrb[4].mxu1 %vm634_vm3, %v856_v16 }
 0x253   : > { %2132 = vmatpush3.bf16.msra.mxu0 %v2215_v15  ;;  %2139 = vmatprep.mubr.msk.bf16.mxu0 %vm2291_vm1, %v2290_v9 }
 0x254   : > { %2133 = vmatprep.subr.bf16.mxu0 %v2290_v9  ;;  %2144 = vmatpush3.msk.msra.mxu1 %vm1089_vm8, %v1077_v17 }
 0x255   : > { %2145 = vmatprep.mubr.msk.f32.mxu1 %vm2291_vm1, %v2290_v9  ;;  %2148 = vmatprep.subr.bf16.mxu1 %v2290_v9 }
 0x257   : > { %2134 = vmatpush3.bf16.msra.mxu0 %v2216_v18  ;;  %v2594_v18 = vsub.s32 %v1177_v11, %v2493_v31 }
 0x258   : > { %2135 = vmatprep.subr.bf16.mxu0 %v2290_v9 }
 0x25b   : > { %2136 = vmatpush3.bf16.msra.mxu0 %v2217_v19 }
 0x25c   : > { %2137 = vmatprep.subr.bf16.mxu0 %v2290_v9 }
 0x25f   : > { %2138 = vmatpush3.bf16.msra.mxu0 %v2218_v20 }
 0x260   : > { %2160 = vmatprep.subr.bf16.mxu0 %v2290_v9 }
 0x262   : > { %2140 = vmatmul.mubr.msk.bf16.vlgmr.msra.gmra.mrb[8].mxu0 %vm634_vm3, %v856_v16 }
 0x263   : > { %2164 = vmatprep.mubr.msk.bf16.mxu0 %vm2291_vm1, %v2290_v9 }
 0x325   : > { %v927_v21 = vpop.f32.mrb[4].mxu0  ;;  %v999_v22 = vpop.f32.mrb[4].mxu1 }
 0x326   : > { %v2117_v23 = vpop.f32.mrb[5].mxu0  ;;  %v2129_v24 = vpop.f32.mrb[5].mxu1  ;;  %2146 = vmatmul.mubr.msk.f32.vlgmr.msra.gmra.mrb[8].mxu1 %vm1085_vm9, %v927_v21  ;;  %v1304_v25 = vrot.slane %v999_v22, %v2499_v33  ;;  %v1290_v26 = vrot.slane %v999_v22, %v2508_v36  ;;  %v1339_v37 = vrot.slane %v999_v22, %v1338_v27  ;;  %v1297_v38 = vrot.slane %v999_v22, %v2496_v32 }
 0x327   : > { %v930_v28 = vpop.f32.mrb[6].mxu0  ;;  %v1002_v29 = vpop.f32.mrb[6].mxu1  ;;  %2156 = vmatprep.mubr.msk.bf16.mxu1 %vm2291_vm1, %v2290_v9  ;;  %v1311_v39 = vrot.slane %v999_v22, %v2505_v35  ;;  %v1318_v41 = vrot.slane %v999_v22, %v1317_v40  ;;  %v1325_v47 = vrot.slane %v999_v22, %v1324_v43  ;;  %v1332_v52 = vrot.slane %v999_v22, %v1331_v48 }
 0x328   : > { %1306 = vbcast.lane.b32.xlu0 %v1304_v25, 256  ;;  %1292 = vbcast.lane.b32.xlu1 %v1290_v26, 256  ;;  %v2118_v30 = vpop.f32.mrb[7].mxu0  ;;  %v2130_v34 = vpop.f32.mrb[7].mxu1  ;;  %v2603_v25 = vld [vmem:[%s2748_s12] sm:$0xff] }
 0x329   : > { %2149 = vmatpush3.bf16.msra.mxu1 %v2219_v58 }
 0x32a   : > { %2150 = vmatprep.subr.bf16.mxu1 %v2290_v9 }
 0x32c   : > { %1341 = vbcast.lane.b32.xlu0 %v1339_v37, 256  ;;  %1299 = vbcast.lane.b32.xlu1 %v1297_v38, 256 }
 0x330   : > { %1313 = vbcast.lane.b32.xlu1 %v1311_v39, 256 }
 0x334   : > { %1320 = vbcast.lane.b32.xlu1 %v1318_v41, 256 }
 0x335   : > { %v1071_v44 = vpop.f32.mrb[8].mxu0 }
 0x336   : > { %v2141_v45 = vpop.f32.mrb[9].mxu0  ;;  %v1484_v46 = vrot.slane %v1071_v44, %v2505_v35  ;;  %v1498_v51 = vrot.slane %v1071_v44, %v1324_v43  ;;  %v1512_v53 = vrot.slane %v1071_v44, %v1338_v27  ;;  %v1470_v54 = vrot.slane %v1071_v44, %v2496_v32  ;;  %v2220_v32 = vld [vmem:[%s2750_s14 + $0x8] sm:$0xff]  }
 0x337   : > { %v1074_v49 = vpop.f32.mrb[10].mxu0  ;;  %v1477_v55 = vrot.slane %v1071_v44, %v2499_v33  ;;  %v1463_v35 = vrot.slane %v1071_v44, %v2508_v36  ;;  %v1491_v56 = vrot.slane %v1071_v44, %v1317_v40  ;;  %v1505_v57 = vrot.slane %v1071_v44, %v1331_v48  ;;  %2151 = vmatpush3.bf16.msra.mxu1 %v2220_v32  ;;  %v2221_v33 = vld [vmem:[%s2750_s14 + $0x10] sm:$0xff]  }
 0x338   : > { %1486 = vbcast.lane.b32.xlu0 %v1484_v46, 256  ;;  %v2142_v50 = vpop.f32.mrb[11].mxu0  ;;  %1327 = vbcast.lane.b32.xlu1 %v1325_v47, 256 }
 0x339   : > { %2152 = vmatprep.subr.bf16.mxu1 %v2290_v9 }
 0x33b   : > { %2153 = vmatpush3.bf16.msra.mxu1 %v2221_v33 }
 0x33c   : > { %1500 = vbcast.lane.b32.xlu0 %v1498_v51, 256  ;;  %1334 = vbcast.lane.b32.xlu1 %v1332_v52, 256 }
 0x33d   : > { %2154 = vmatprep.subr.bf16.mxu1 %v2290_v9 }
 0x33f   : > { %2155 = vmatpush3.bf16.msra.mxu1 %v2222_v59 }
 0x340   : > { %1514 = vbcast.lane.b32.xlu0 %v1512_v53, 256  ;;  %1472 = vbcast.lane.b32.xlu1 %v1470_v54, 256 }
 0x344   : > { %1479 = vbcast.lane.b32.xlu1 %v1477_v55, 256 }
 0x348   : > { %1465 = vbcast.lane.b32.xlu1 %v1463_v35, 256 }
 0x34c   : > { %1493 = vbcast.lane.b32.xlu1 %v1491_v56, 256 }
 0x350   : > { %1507 = vbcast.lane.b32.xlu1 %v1505_v57, 256 }
 0x39a   : > { %v2584_v3 = vpop.permute.xlu1 %1292 }
 0x39e   : > { %v2586_v5 = vpop.permute.xlu1 %1299 }
 0x3a2   : > { %v2588_v10 = vpop.permute.xlu1 %1313 }
 0x3a6   : > { %v2591_v15 = vpop.permute.xlu1 %1320 }
 0x3aa   : > { %v2597_v21 = vpop.permute.xlu1 %1327 }
 0x3ae   : > { %v2610_v37 = vpop.permute.xlu1 %1334 }
 0x3b2   : > { %v1473_v51 = vpop.permute.xlu1 %1472 }
 0x3b6   : > { %v1480_v33 = vpop.permute.xlu1 %1479 }
 0x3f9   : > { %v1159_v61 = vpop.f32.mrb[8].mxu1 }
 0x3fa   : > { %v1160_v62 = vadd.f32 %v2036_v60, %v1159_v61  ;;  %v2147_v63 = vpop.f32.mrb[9].mxu1 }
 0x3fc   : > { %v1164_v0 = vand.u32 2147483647, %v1160_v62  ;;  %v1163_v16 = vmax.f32 %v1160_v62, 0.0  ;;  %v1442_v62 = vld [vmem:[#allocation2] sm:$0xff] }
 0x3fe   : > { %v1165_v1 = vsub.f32 0.0, %v1164_v0 }
 0x400   : > { %v1166_v2 = vmul.f32 1.442695, %v1165_v1 }
 0x402   : > { %2233 = vpow2.f32 %v1166_v2 }
 0x40c   : > { %v2234_v4 = vpop.eup %2233 }
 0x40d   : > { %v1168_v6 = vadd.f32 1.0, %v2234_v4 }
 0x40f   : > { %2235 = vlog2.f32 %v1168_v6 }
 0x410   : > { %2237 = vpow2.f32 %v2040_v12 }
 0x419   : > { %v2236_v13 = vpop.eup %2235 }
 0x41a   : > { %v1170_v17 = vmul.f32 0.6931472, %v2236_v13  ;;  %v2238_v34 = vpop.eup %2237 }
 0x41b   : > { %v1615_v44 = vadd.f32 1.0, %v2238_v34 }
 0x41c   : > { %v1171_v19 = vadd.f32 %v1170_v17, %v1163_v16 }
 0x41e   : > { %v1181_v20 = vrot.slane %v1171_v19, %v2594_v18  ;;  %v1174_v22 = vcombine.high %v1171_v19, %v1171_v19  ;;  %v1343_v30 = vmul.f32 %v1171_v19, %v2519_v14  ;;  %v1466_v19 = vpop.permute.xlu1 %1465 }
 0x420   : > { %v1189_v23 = vcombine.high %v1181_v20, %v1181_v20  ;;  %v1197_v24 = vrot.slane %v1181_v20, %v2594_v18  ;;  %v1188_v28 = vrot.slane %v1174_v22, %v2594_v18  ;;  %v1352_v47 = vrot.slane %v1343_v30, %v2594_v18 }
 0x421   : > { %v1345_v1 = vcombine.high %v1343_v30, %v1343_v30 }
 0x422   : > { %v1211_v26 = vrot.slane %v1189_v23, %v2594_v18  ;;  %v1219_v27 = vcombine.high %v1197_v24, %v1197_v24  ;;  %v1226_v31 = vrot.slane %v1197_v24, %v2508_v36  ;;  %v1190_v45 = vcombine.high %v1188_v28, %v1188_v28 }
 0x423   : > { %v1204_v46 = vrot.slane %v1188_v28, %v2594_v18  ;;  %v1360_v53 = vcombine.high %v1352_v47, %v1352_v47  ;;  %v1368_v54 = vrot.slane %v1352_v47, %v2594_v18  ;;  %v1359_v20 = vrot.slane %v1345_v1, %v2594_v18 }
 0x424   : > { %v1230_v29 = vrot.slane %v1211_v26, %v2508_v36  ;;  %v1221_v38 = vcombine.high %v1211_v26, %v1211_v26  ;;  %v1234_v39 = vrot.slane %v1219_v27, %v2508_v36  ;;  %v1263_v40 = vmul.f32 %v1226_v31, %v2603_v25  ;;  %v1307_v27 = vpop.permute.xlu0 %1306 }
 0x425   : > { %v1218_v52 = vrot.slane %v1190_v45, %v2594_v18  ;;  %v1242_v55 = vrot.slane %v1204_v46, %v2508_v36  ;;  %v1220_v57 = vcombine.high %v1204_v46, %v1204_v46  ;;  %v1382_v58 = vrot.slane %v1360_v53, %v2594_v18 }
 0x426   : > { %v1264_v41 = vmul.f32 %v1230_v29, %v2603_v25  ;;  %v1271_v43 = vmul.f32 1.442695, %v1263_v40  ;;  %v1238_v48 = vrot.slane %v1221_v38, %v2508_v36  ;;  %v1265_v49 = vmul.f32 %v1234_v39, %v2603_v25 }
 0x427   : > { %v1397_v32 = vrot.slane %v1368_v54, %v2508_v36  ;;  %v1246_v59 = vrot.slane %v1218_v52, %v2508_v36  ;;  %v1267_v60 = vmul.f32 %v1242_v55, %v2603_v25  ;;  %v1222_v0 = vcombine.high %v1218_v52, %v1218_v52  ;;  %v2039_v55 = vld [vmem:[%s2749_s13] ss:$0 sm:$0xff] }
 0x428   : > { %2239 = vpow2.f32 %v1271_v43  ;;  %v1273_v50 = vmul.f32 1.442695, %v1264_v41  ;;  %v1266_v35 = vmul.f32 %v1238_v48, %v2603_v25  ;;  %v1275_v56 = vmul.f32 1.442695, %v1265_v49 }
 0x429   : > { %2241 = vrcp.f32 %v1615_v44  ;;  %v1390_v2 = vcombine.high %v1368_v54, %v1368_v54  ;;  %v1401_v4 = vrot.slane %v1382_v58, %v2508_v36  ;;  %v1434_v6 = vmul.f32 %v1397_v32, %v2584_v3 }
 0x42a   : > { %2243 = vpow2.f32 %v1273_v50  ;;  %v1277_v61 = vmul.f32 1.442695, %v1266_v35  ;;  %v1250_v8 = vrot.slane %v1220_v57, %v2508_v36  ;;  %v1268_v11 = vmul.f32 %v1246_v59, %v2603_v25  ;;  %v2649_v35 = vpop.permute.xlu0 %1341 }
 0x42b   : > { %2245 = vpow2.f32 %v1275_v56  ;;  %v1279_v12 = vmul.f32 1.442695, %v1267_v60  ;;  %v1392_v22 = vcombine.high %v1382_v58, %v1382_v58  ;;  %v1405_v23 = vrot.slane %v1390_v2, %v2508_v36 }
 0x42c   : > { %2247 = vpow2.f32 %v1277_v61  ;;  %v1435_v24 = vmul.f32 %v1401_v4, %v2586_v5  ;;  %v1254_v31 = vrot.slane %v1222_v0, %v2508_v36  ;;  %v1269_v28 = vmul.f32 %v1250_v8, %v2603_v25 }
 0x42d   : > { %2249 = vpow2.f32 %v1279_v12  ;;  %v1281_v29 = vmul.f32 1.442695, %v1268_v11  ;;  %v1361_v40 = vcombine.high %v1359_v20, %v1359_v20  ;;  %v1375_v41 = vrot.slane %v1359_v20, %v2594_v18 }
 0x42e   : > { %v1409_v43 = vrot.slane %v1392_v22, %v2508_v36  ;;  %v1436_v44 = vmul.f32 %v1405_v23, %v1307_v27  ;;  %v1270_v47 = vmul.f32 %v1254_v31, %v2603_v25  ;;  %v1283_v48 = vmul.f32 1.442695, %v1269_v28 }
 0x42f   : > { %2251 = vpow2.f32 %v1281_v29  ;;  %v1413_v58 = vrot.slane %v1375_v41, %v2508_v36  ;;  %v2656_v0 = vmul.f32 %v2039_v55, %v2519_v14 }
 0x430   : > { %v1437_v32 = vmul.f32 %v1409_v43, %v2588_v10  ;;  %2253 = vpow2.f32 %v1283_v48  ;;  %v1285_v61 = vmul.f32 1.442695, %v1270_v47 }
 0x431   : > { %v1438_v12 = vmul.f32 %v1413_v58, %v2591_v15  ;;  %v1590_v47 = vrot.slane %v2656_v0, 2 }
 0x432   : > { %v2240_v63 = vpop.eup %2239  ;;  %2255 = vpow2.f32 %v1285_v61 }
 0x433   : > { %v1443_v7 = vmul.f32 %v2240_v63, %v1442_v62  ;;  %v2242_v13 = vpop.eup %2241 }
 0x434   : > { %v2244_v17 = vpop.eup %2243  ;;  %v2637_v30 = vmul.f32 %v2242_v13, %v2513_v42 }
 0x435   : > { %v1444_v16 = vadd.f32 %v1443_v7, %v1434_v6  ;;  %v2246_v39 = vpop.eup %2245  ;;  %v1487_v6 = vpop.permute.xlu0 %1486  ;;  %v1391_v7 = vcombine.high %v1375_v41, %v1375_v41 }
 0x436   : > { %v1620_v52 = vrot.slane %v2637_v30, 1  ;;  %v1621_v53 = vrot.slane %v2637_v30, 2  ;;  %v2248_v54 = vpop.eup %2247  ;;  %v1622_v57 = vrot.slane %v2637_v30, 3  ;;  %v1623_v2 = vrot.slane %v2637_v30, 4 }
 0x437   : > { %v1445_v26 = vmul.f32 %v2244_v17, %v1444_v16  ;;  %v1516_v3 = vmul.f32 %v1466_v19, %v1444_v16  ;;  %v2250_v4 = vpop.eup %2249  ;;  %v1421_v15 = vrot.slane %v1391_v7, %v2508_v36 }
 0x439   : > { %v1446_v34 = vadd.f32 %v1445_v26, %v1435_v24  ;;  %v1524_v38 = vsel %vm634_vm3, %v1516_v3, 0.0  ;;  %v1589_v24 = vrot.slane %v2656_v0, 1  ;;  %v2252_v26 = vpop.eup %2251  ;;  %v1494_v3 = vpop.permute.xlu1 %1493  ;;  %v1440_v55 = vmul.f32 %v1421_v15, %v2610_v37 }
 0x43a   : > { %v1525_v5 = vrot.slane %v1524_v38, 4  ;;  %v2254_v48 = vpop.eup %2253 }
 0x43b   : > { %v1447_v45 = vmul.f32 %v2246_v39, %v1446_v34  ;;  %v1517_v46 = vmul.f32 %v1473_v51, %v1446_v34  ;;  %v1389_v51 = vrot.slane %v1361_v40, %v2594_v18 }
 0x43c   : > { %v1526_v49 = vadd.f32 %v1525_v5, %v1524_v38 }
 0x43d   : > { %v1448_v42 = vadd.f32 %v1447_v45, %v1436_v44  ;;  %v1531_v50 = vsel %vm634_vm3, %v1517_v46, 0.0  ;;  %v1393_v20 = vcombine.high %v1389_v51, %v1389_v51 }
 0x43e   : > { %v1527_v25 = vrot.slane %v1526_v49, 2  ;;  %v1532_v56 = vrot.slane %v1531_v50, 4 }
 0x43f   : > { %v1449_v59 = vmul.f32 %v2248_v54, %v1448_v42  ;;  %v1518_v60 = vmul.f32 %v1480_v33, %v1448_v42  ;;  %v1417_v33 = vrot.slane %v1389_v51, %v2508_v36  ;;  %v1425_v44 = vrot.slane %v1393_v20, %v2508_v36 }
 0x440   : > { %v1528_v62 = vadd.f32 %v1527_v25, %v1526_v49  ;;  %v1533_v63 = vadd.f32 %v1532_v56, %v1531_v50  ;;  %v1501_v49 = vpop.permute.xlu0 %1500  ;;  %v1591_v56 = vrot.slane %v2656_v0, 3 }
 0x441   : > { %v1450_v1 = vadd.f32 %v1449_v59, %v1437_v32  ;;  %v1538_v18 = vsel %vm634_vm3, %v1518_v60, 0.0  ;;  %v1439_v34 = vmul.f32 %v1417_v33, %v2597_v21  ;;  %v1441_v60 = vmul.f32 %v1425_v44, %v2649_v35 }
 0x442   : > { %v1529_v8 = vrot.slane %v1528_v62, 1  ;;  %v1534_v11 = vrot.slane %v1533_v63, 2  ;;  %v1539_v10 = vrot.slane %v1538_v18, 4  ;;  %v1593_v44 = vrot.slane %v2656_v0, 5 }
 0x443   : > { %v1451_v13 = vmul.f32 %v2250_v4, %v1450_v1  ;;  %v1519_v16 = vmul.f32 %v1487_v6, %v1450_v1  ;;  %v2256_v1 = vpop.eup %2255 }
 0x444   : > { %v1530_v14 = vadd.f32 %v1529_v8, %v1528_v62  ;;  %v1535_v17 = vadd.f32 %v1534_v11, %v1533_v63  ;;  %v1540_v19 = vadd.f32 %v1539_v10, %v1538_v18  ;;  %v1592_v63 = vrot.slane %v2656_v0, 4  ;;  %v1508_v18 = vpop.permute.xlu1 %1507 }
 0x445   : > { %v1452_v22 = vadd.f32 %v1451_v13, %v1438_v12  ;;  %v1545_v23 = vsel %vm634_vm3, %v1519_v16, 0.0 }
 0x446   : > { %v1536_v27 = vrot.slane %v1535_v17, 1  ;;  %v1541_v31 = vrot.slane %v1540_v19, 2  ;;  %v1546_v28 = vrot.slane %v1545_v23, 4  ;;  %v1604_v29 = vadd.f32 %v2656_v0, %v1530_v14 }
 0x447   : > { %v1453_v38 = vmul.f32 %v2252_v26, %v1452_v22  ;;  %v1520_v39 = vmul.f32 %v1494_v3, %v1452_v22 }
 0x448   : > { %v1537_v40 = vadd.f32 %v1536_v27, %v1535_v17  ;;  %v1542_v41 = vadd.f32 %v1541_v31, %v1540_v19  ;;  %v1547_v5 = vadd.f32 %v1546_v28, %v1545_v23  ;;  %v1635_v43 = vmul.f32 %v2637_v30, %v1604_v29  ;;  %v1515_v19 = vpop.permute.xlu0 %1514 }
 0x449   : > { %v1454_v45 = vadd.f32 %v1453_v38, %v1439_v34  ;;  %v1552_v46 = vsel %vm634_vm3, %v1520_v39, 0.0 }
 0x44a   : > { %v1543_v42 = vrot.slane %v1542_v41, 1  ;;  %v1548_v50 = vrot.slane %v1547_v5, 2  ;;  %v1553_v54 = vrot.slane %v1552_v46, 4  ;;  %v1605_v21 = vadd.f32 %v1589_v24, %v1537_v40 }
 0x44b   : > { %v1455_v51 = vmul.f32 %v2254_v48, %v1454_v45  ;;  %v1521_v25 = vmul.f32 %v1501_v49, %v1454_v45  ;;  %v1643_v10 = vpack.c.bf16 %v1635_v43, %v1635_v43 }
 0x44c   : > { %v1544_v58 = vadd.f32 %v1543_v42, %v1542_v41  ;;  %v1549_v32 = vadd.f32 %v1548_v50, %v1547_v5  ;;  %v1554_v36 = vadd.f32 %v1553_v54, %v1552_v46  ;;  %v1636_v59 = vmul.f32 %v1620_v52, %v1605_v21 }
 0x44d   : > { %v1456_v61 = vadd.f32 %v1455_v51, %v1440_v55  ;;  %v1559_v62 = vsel %vm634_vm3, %v1521_v25, 0.0  ;;  %v1667_v27 = vunpack.c.l.b16 %v1643_v10  ;;  %v1624_v42 = vrot.slane %v2637_v30, 5 }
 0x44e   : > { %v1550_v37 = vrot.slane %v1549_v32, 1  ;;  %v1555_v4 = vrot.slane %v1554_v36, 2  ;;  %v1560_v6 = vrot.slane %v1559_v62, 4  ;;  %v1606_v7 = vadd.f32 %v1590_v47, %v1544_v58 }
 0x44f   : > { %v1457_v8 = vmul.f32 %v2256_v1, %v1456_v61  ;;  %v1522_v11 = vmul.f32 %v1508_v18, %v1456_v61  ;;  %v1644_v33 = vpack.c.bf16 %v1636_v59, %v1636_v59  ;;  %v1625_v61 = vrot.slane %v2637_v30, 6 }
 0x450   : > { %v1556_v12 = vadd.f32 %v1555_v4, %v1554_v36  ;;  %v1561_v13 = vadd.f32 %v1560_v6, %v1559_v62  ;;  %v1551_v52 = vadd.f32 %v1550_v37, %v1549_v32  ;;  %v1637_v35 = vmul.f32 %v1621_v53, %v1606_v7 }
 0x451   : > { %v1458_v16 = vadd.f32 %v1457_v8, %v1441_v60  ;;  %v1566_v14 = vsel %vm634_vm3, %v1522_v11, 0.0  ;;  %v1668_v17 = vunpack.c.l.b16 %v1644_v33  ;;  %v1595_v37 = vrot.slane %v2656_v0, 7 }
 0x452   : > { %v1557_v20 = vrot.slane %v1556_v12, 1  ;;  %v1562_v22 = vrot.slane %v1561_v13, 2  ;;  %v1567_v23 = vrot.slane %v1566_v14, 4  ;;  %v1607_v24 = vadd.f32 %v1591_v56, %v1551_v52 }
 0x453   : > { %1459 = vst.msk [vmem:[#allocation2] sm:$0xff] %vm634_vm3, %v1458_v16  ;;  %v1523_v26 = vmul.f32 %v1515_v19, %v1458_v16  ;;  %v1645_v3 = vpack.c.bf16 %v1637_v35, %v1637_v35  ;;  %v1675_v31 = vrot.slane %v1668_v17, 7  ;;  %v1594_v56 = vrot.slane %v2656_v0, 6 }
 0x454   : > { %v1568_v28 = vadd.f32 %v1567_v23, %v1566_v14  ;;  %v1558_v29 = vadd.f32 %v1557_v20, %v1556_v12  ;;  %v1563_v15 = vadd.f32 %v1562_v22, %v1561_v13  ;;  %v1638_v53 = vmul.f32 %v1622_v57, %v1607_v24  ;;  %v2224_v23 = vld [vmem:[%s2751_s15 + $0x8] sm:$0xff]  }
 0x455   : > { %v1573_v34 = vsel %vm634_vm3, %v1523_v26, 0.0  ;;  %v1669_v38 = vunpack.c.l.b16 %v1645_v3  ;;  %v1677_v39 = vsel %vm1676_vm10, %v1675_v31, %v1667_v27  ;;  %v1626_v10 = vrot.slane %v2637_v30, 7  ;;  %v2223_v30 = vld [vmem:[%s2751_s15] sm:$0xff]  }
 0x456   : > { %v1564_v40 = vrot.slane %v1563_v15, 1  ;;  %v1569_v41 = vrot.slane %v1568_v28, 2  ;;  %v1574_v5 = vrot.slane %v1573_v34, 4  ;;  %v1608_v43 = vadd.f32 %v1592_v63, %v1558_v29  ;;  %2161 = vmatpush3.bf16.msra.mxu0 %v2223_v30 }
 0x457   : > { %v1646_v45 = vpack.c.bf16 %v1638_v53, %v1638_v53  ;;  %v1678_v46 = vrot.slane %v1669_v38, 6  ;;  %2162 = vmatprep.subr.bf16.mxu0 %v2290_v9 }
 0x458   : > { %v1565_v47 = vadd.f32 %v1564_v40, %v1563_v15  ;;  %v1570_v48 = vadd.f32 %v1569_v41, %v1568_v28  ;;  %v1575_v49 = vadd.f32 %v1574_v5, %v1573_v34  ;;  %v1639_v57 = vmul.f32 %v1623_v2, %v1608_v43 }
 0x459   : > { %v1670_v50 = vunpack.c.l.b16 %v1646_v45  ;;  %v1680_v54 = vsel %vm1679_vm11, %v1678_v46, %v1677_v39 }
 0x45a   : > { %v1571_v21 = vrot.slane %v1570_v48, 1  ;;  %v1576_v55 = vrot.slane %v1575_v49, 2  ;;  %v1609_v51 = vadd.f32 %v1593_v44, %v1565_v47  ;;  %v1647_v25 = vpack.c.bf16 %v1639_v57, %v1639_v57  ;;  %2163 = vmatpush3.bf16.msra.mxu0 %v2224_v23 }
 0x45b   : > { %v1681_v58 = vrot.slane %v1670_v50, 5  ;;  %2168 = vmatprep.subr.bf16.mxu0 %v2290_v9 }
 0x45c   : > { %v1572_v32 = vadd.f32 %v1571_v21, %v1570_v48  ;;  %v1577_v36 = vadd.f32 %v1576_v55, %v1575_v49  ;;  %v1640_v59 = vmul.f32 %v1624_v42, %v1609_v51  ;;  %v1671_v60 = vunpack.c.l.b16 %v1647_v25  ;;  %v2225_v25 = vld [vmem:[%s2753_s17] sm:$0xff]  }
 0x45d   : > { %v1683_v62 = vsel %vm1682_vm12, %v1681_v58, %v1680_v54  ;;  %v2226_v58 = vld [vmem:[%s2753_s17 + $0x8] sm:$0xff]  }
 0x45e   : > { %v1578_v2 = vrot.slane %v1577_v36, 1  ;;  %v1610_v63 = vadd.f32 %v1594_v56, %v1572_v32  ;;  %v1648_v1 = vpack.c.bf16 %v1640_v59, %v1640_v59  ;;  %v1684_v18 = vrot.slane %v1671_v60, 4 }
 0x460   : > { %v1579_v4 = vadd.f32 %v1578_v2, %v1577_v36  ;;  %v1641_v6 = vmul.f32 %v1625_v61, %v1610_v63  ;;  %v1672_v7 = vunpack.c.l.b16 %v1648_v1  ;;  %v1686_v8 = vsel %vm1685_vm13, %v1684_v18, %v1683_v62  ;;  %v2050_v61 = vld [vmem:[%s2754_s18] ss:$0 sm:$0xff] }
 0x462   : > { %v1611_v11 = vadd.f32 %v1595_v37, %v1579_v4  ;;  %v1649_v33 = vpack.c.bf16 %v1641_v6, %v1641_v6  ;;  %v1687_v12 = vrot.slane %v1672_v7, 3  ;;  %v2046_v6 = vld [vmem:[%s2752_s16] ss:$0 sm:$0xff] }
 0x464   : > { %v1642_v13 = vmul.f32 %v1626_v10, %v1611_v11  ;;  %v1673_v52 = vunpack.c.l.b16 %v1649_v33  ;;  %v1689_v35 = vsel %vm1688_vm14, %v1687_v12, %v1686_v8  ;;  %v2265_v10 = vld [vmem:[%s2419_s24] sm:$0xff] }
 0x466   : > { %v1650_v16 = vpack.c.bf16 %v1642_v13, %v1642_v13  ;;  %v1690_v14 = vrot.slane %v1673_v52, 2 }
 0x468   : > { %v1674_v17 = vunpack.c.l.b16 %v1650_v16  ;;  %v1692_v19 = vsel %vm1691_vm15, %v1690_v14, %v1689_v35 }
 0x46a   : > { %v1693_v0 = vrot.slane %v1674_v17, 1 }
 0x46c   : > { %v1695_v20 = vsel %vm1694_vm2, %v1693_v0, %v1692_v19 }
 0x46d   : > { %v1696_v22 = vpack.c.b16 %v1695_v20, %v1695_v20 }
 0x46f   : > { %2157 = vmatmul.mubr.msk.bf16.vlgmr.msra.gmra.mrb[12].mxu1 %vm634_vm3, %v1696_v22 }
 0x542   : > { %v1758_v24 = vpop.f32.mrb[12].mxu1 }
 0x543   : > { %v1764_v26 = vmul.f32 0.70710677, %v1758_v24  ;;  %v2158_v3 = vpop.f32.mrb[13].mxu1  ;;  %v1788_v21 = vmul.f32 0.5, %v1758_v24 }
 0x544   : > { %v1761_v27 = vpop.f32.mrb[14].mxu1 }
 0x545   : > { %v1765_v31 = vand.u32 2147483647, %v1764_v26  ;;  %v2159_v28 = vpop.f32.mrb[15].mxu1  ;;  %vm1785_vm3 = vcmp.ge.f32.partialorder %v1764_v26, 0.0 }
 0x547   : > { %v1766_v29 = vmul.f32 0.3275911, %v1765_v31  ;;  %v1779_v53 = vsub.f32 0.0, %v1765_v31 }
 0x549   : > { %v1767_v15 = vadd.f32 1.0, %v1766_v29  ;;  %v1780_v38 = vmul.f32 %v1779_v53, %v1765_v31 }
 0x54b   : > { %2257 = vrcp.f32 %v1767_v15  ;;  %v1781_v41 = vmul.f32 1.442695, %v1780_v38 }
 0x54d   : > { %2259 = vpow2.f32 %v1781_v41 }
 0x555   : > { %v2258_v34 = vpop.eup %2257 }
 0x556   : > { %v1770_v39 = vmul.f32 1.0614054, %v2258_v34 }
 0x557   : > { %v2260_v49 = vpop.eup %2259 }
 0x558   : > { %v1771_v40 = vadd.f32 -1.4531521, %v1770_v39 }
 0x55a   : > { %v1772_v5 = vmul.f32 %v2258_v34, %v1771_v40 }
 0x55c   : > { %v1773_v43 = vadd.f32 1.4214138, %v1772_v5 }
 0x55e   : > { %v1774_v44 = vmul.f32 %v2258_v34, %v1773_v43 }
 0x560   : > { %v1775_v45 = vadd.f32 -0.28449672, %v1774_v44 }
 0x562   : > { %v1776_v46 = vmul.f32 %v2258_v34, %v1775_v45 }
 0x564   : > { %v1777_v47 = vadd.f32 0.2548296, %v1776_v46 }
 0x566   : > { %v1778_v48 = vmul.f32 %v2258_v34, %v1777_v47 }
 0x568   : > { %v1783_v57 = vmul.f32 %v2260_v49, %v1778_v48 }
 0x56a   : > { %v1784_v42 = vsub.f32 1.0, %v1783_v57 }
 0x56c   : > { %v1786_v50 = vsub.f32 0.0, %v1784_v42 }
 0x56e   : > { %v1787_v54 = vsel %vm1785_vm3, %v1784_v42, %v1786_v50 }
 0x56f   : > { %v1789_v55 = vadd.f32 1.0, %v1787_v54 }
 0x571   : > { %v1790_v51 = vmul.f32 %v1789_v55, %v1788_v21 }
 0x573   : > { %v1791_v56 = vpack.c.bf16 %v1790_v51, %v1790_v51 }
 0x575   : > { %2165 = vmatmul.mubr.msk.bf16.vlgmr.msra.gmra.mrb[12].mxu0 %vm639_vm0, %v1791_v56 }
 0x576   : > { %2169 = vmatpush3.bf16.msra.mxu0 %v2225_v25  ;;  %2172 = vmatprep.mubr.msk.bf16.mxu0 %vm2291_vm1, %v2290_v9 }
 0x577   : > { %2170 = vmatprep.subr.bf16.mxu0 %v2290_v9 }
 0x57a   : > { %2171 = vmatpush3.bf16.msra.mxu0 %v2226_v58 }
 0x57d   : > { %2173 = vmatmul.mubr.msk.bf16.vlgmr.msra.gmra.mrb[16].mxu0 %vm639_vm0, %v1791_v56 }
 0x648   : > { %v1852_v32 = vpop.f32.mrb[12].mxu0 }
 0x649   : > { %v2166_v36 = vpop.f32.mrb[13].mxu0  ;;  %v1853_v7 = vadd.f32 %v2046_v6, %v1852_v32 }
 0x64a   : > { %v1855_v59 = vpop.f32.mrb[14].mxu0 }
 0x64b   : > { %v2167_v60 = vpop.f32.mrb[15].mxu0 }
 0x650   : > { %v1915_v62 = vpop.f32.mrb[16].mxu0 }
 0x651   : > { %v1916_v2 = vadd.f32 %v2050_v61, %v1915_v62  ;;  %v2174_v63 = vpop.f32.mrb[17].mxu0 }
 0x652   : > { %v1918_v1 = vpop.f32.mrb[18].mxu0 }
 0x653   : > { %v2054_v18 = vmul.f32 -1.442695, %v1916_v2  ;;  %v2175_v37 = vpop.f32.mrb[19].mxu0 }
 0x655   : > { %2261 = vpow2.f32 %v2054_v18 }
 0x65f   : > { %v2262_v9 = vpop.eup %2261 }
 0x660   : > { %v1924_v4 = vadd.f32 1.0, %v2262_v9 }
 0x662   : > { %2263 = vrcp.f32 %v1924_v4 }
 0x66c   : > { %v2264_v8 = vpop.eup %2263 }
 0x66d   : > { %v1927_v11 = vmul.f32 %v2264_v8, %v1853_v7 }
 0x66f   : > { %v1928_v33 = vadd.f32 %v2265_v10, %v1927_v11 }
 0x671   : > { %1929 = vst.msk [vmem:[%s628_s25] sm:$0xff] %vm639_vm0, %v1928_v33 }
 0x672 PF: > { %s29_s20 = sadd.s32 1, %s2288_s20   ;;  %s2765_s0 = smov %s2284_s30 }
 0x673   : > { %p26_p5 = scmp.ge.s32.totalorder %s29_s20, 4   ;;  %s2766_s30 = smov %s2768_s21 }
 0x675   :  { %28 = sbr.rel (!%p26_p5) target bundleno = 5 (0x5), region = 130 }

</bundles_post_ra>
